<compile_context>
chip_gen: v6e
topology: v6e:2x2x1
jax: 0.10.0
libtpu: 0.0.40
codegen_flags: <defaults>
</compile_context>

<pallas_src>
import functools

import jax
import jax.numpy as jnp
from jax.experimental import pallas as pl
from jax.experimental.pallas import tpu as pltpu


_WEIGHT_ORDER = ("w1", "w2", "w3", "whead", "w4", "w5", "w6", "w7")
_BIAS_ORDER = ("b1", "b2", "b3", "bhead", "b4", "b5", "b6", "b7")


def _round_up(v, m):
    return -(-v // m) * m


def _choose_batch_tile(batch, block_b, max_tile=512):
    """Batch tile: multiple of 8, big enough to amortize the ~0.35 us
    per-grid-step overhead, and (for B >= 256) chosen so >= 2 tiles exist,
    letting dimension_semantics=("parallel",) shard across v7x's two TCs."""
    if block_b is not None:
        return max(8, _round_up(min(block_b, batch), 8))
    if batch < 256:
        return _round_up(batch, 8)                   # single tile
    half = max(128, (batch // 2) // 128 * 128)       # >= 2 tiles for big B
    return min(max_tile, half)


def vade_forward_kernel(
    # inputs
    x_ref, eps_ref,
    w1_ref, w2_ref, w3_ref, whead_ref, w4_ref, w5_ref, w6_ref, w7_ref,
    ball_ref,
    # outputs
    xhat_ref, mlz_ref,
    *, latent_dim, bias_offsets, mlz_pad,
):
    def bias(i):
        off, width = bias_offsets[i]
        return ball_ref[:, off:off + width]          # static 128-aligned view

    def lin(a_bf16, w_ref, bi):
        # bf16 x bf16 on the MXU, f32 accumulation, f32 bias add.
        return jnp.dot(a_bf16, w_ref[...],
                       preferred_element_type=jnp.float32) + bias(bi)

    def relu_bf16(y_f32):
        # single f32->bf16 pack per layer; keeps inter-layer activations bf16
        return jnp.maximum(y_f32, 0.0).astype(jnp.bfloat16)

    x = x_ref[...]                                   # bf16 (cast in wrapper)

    # ---- encode ----
    h = relu_bf16(lin(x, w1_ref, 0))
    h = relu_bf16(lin(h, w2_ref, 1))
    h = relu_bf16(lin(h, w3_ref, 2))

    # fused mu|log_var head (single matmul), kept in f32
    head = lin(h, whead_ref, 3)                      # (tb, 2*latent)
    mu = head[:, :latent_dim]
    log_var = head[:, latent_dim:]

    # ---- reparameterize (f32) ----
    z = mu + eps_ref[...] * jnp.exp(log_var * 0.5)

    # ---- decode ----
    d = relu_bf16(lin(z.astype(jnp.bfloat16), w4_ref, 4))
    d = relu_bf16(lin(d, w5_ref, 5))
    d = relu_bf16(lin(d, w6_ref, 6))
    xhat_ref[...] = lin(d, w7_ref, 7).astype(xhat_ref.dtype)

    # ---- lane-dense packed writeback: mu|log_var|z|zero-pad (one full vst) --
    parts = [head, z]
    if mlz_pad:
        parts.append(jnp.zeros((head.shape[0], mlz_pad), jnp.float32))
    mlz_ref[...] = jnp.concatenate(parts, axis=-1)


@functools.partial(jax.jit, static_argnames=("block_b",))
def vade_forward(x, eps, params, block_b=None):
    """Fused VaDE forward. Returns (x_hat, mu, log_var, z)."""
    B, input_dim = x.shape
    latent_dim = eps.shape[1]

    tb = _choose_batch_tile(B, block_b)
    n_tiles = -(-B // tb)
    b_pad = n_tiles * tb

    # bf16 input stream (kernel consumed x in bf16 anyway): halves x traffic
    x = x.astype(jnp.bfloat16)
    if b_pad != B:
        x = jnp.pad(x, ((0, b_pad - B), (0, 0)))
        eps = jnp.pad(eps, ((0, b_pad - B), (0, 0)))

    weights = [params[k] for k in _WEIGHT_ORDER]

    # Pack the 8 biases (each padded to a 128-lane multiple) into one resident
    # f32 slab so the pallas_call carries 1 bias operand instead of 8.
    bias_offsets = []
    pieces = []
    off = 0
    for wname, bname in zip(_WEIGHT_ORDER, _BIAS_ORDER):
        width = params[wname].shape[1]
        b = params[bname].astype(jnp.float32).reshape(1, width)
        padded = _round_up(width, 128)
        if padded != width:
            b = jnp.pad(b, ((0, 0), (0, padded - width)))
        bias_offsets.append((off, width))
        pieces.append(b)
        off += padded
    b_all = jnp.concatenate(pieces, axis=1)
    bias_offsets = tuple(bias_offsets)

    mlz_w = _round_up(3 * latent_dim, 128)           # lane-dense output width
    mlz_pad = mlz_w - 3 * latent_dim

    def row_spec(width):
        # batch-tiled activation block
        return pl.BlockSpec((tb, width), lambda i: (i, 0))

    def resident_spec(arr):
        # whole array, constant block index -> stays resident in VMEM
        return pl.BlockSpec(arr.shape, lambda i: (0, 0))

    in_specs = ([row_spec(input_dim), row_spec(latent_dim)]
                + [resident_spec(w) for w in weights]
                + [resident_spec(b_all)])

    out_shapes = (
        jax.ShapeDtypeStruct((b_pad, input_dim), jnp.float32),   # x_hat
        jax.ShapeDtypeStruct((b_pad, mlz_w), jnp.float32),       # mu|lv|z|pad
    )
    out_specs = (row_spec(input_dim), row_spec(mlz_w))

    kernel = functools.partial(
        vade_forward_kernel, latent_dim=latent_dim,
        bias_offsets=bias_offsets, mlz_pad=mlz_pad)

    x_hat, mlz = pl.pallas_call(
        kernel,
        out_shape=out_shapes,
        grid=(n_tiles,),
        in_specs=in_specs,
        out_specs=out_specs,
        compiler_params=pltpu.CompilerParams(
            dimension_semantics=("parallel",)),      # megacore sharding (v7x)
    )(x, eps, *weights, b_all)

    x_hat = x_hat[:B]
    mlz = mlz[:B]
    mu = mlz[:, :latent_dim]
    log_var = mlz[:, latent_dim:2 * latent_dim]
    z = mlz[:, 2 * latent_dim:3 * latent_dim]
    return x_hat, mu, log_var, z


def init_params(key, input_dim, hidden_dims, latent_dim, n_classes,
                weight_dtype=jnp.bfloat16):
    """Synthetic init mirroring the PyTorch module's shapes.

    PyTorch nn.Linear weight is (out, in); we store (in, out). Weights are
    cast to bf16 (MXU-native); biases kept f32. mu/log_var head weights are
    fused into a single (hidden2, 2*latent) weight.
    """
    dims = {
        "fc1": (input_dim, hidden_dims[0]),
        "fc2": (hidden_dims[0], hidden_dims[0]),
        "fc3": (hidden_dims[0], hidden_dims[1]),
        "mu": (hidden_dims[1], latent_dim),
        "log_var": (hidden_dims[1], latent_dim),
        "fc4": (latent_dim, hidden_dims[1]),
        "fc5": (hidden_dims[1], hidden_dims[0]),
        "fc6": (hidden_dims[0], hidden_dims[0]),
        "fc7": (hidden_dims[0], input_dim),
    }
    raw = {}
    keys = jax.random.split(key, 2 * len(dims) + 1)
    ki = 0
    for layer, (din, dout) in dims.items():
        wk, bk = keys[ki], keys[ki + 1]
        ki += 2
        bound = 1.0 / jnp.sqrt(float(din))  # PyTorch default Linear init range
        raw[layer + "_w"] = jax.random.uniform(
            wk, (din, dout), jnp.float32, -bound, bound)
        raw[layer + "_b"] = jax.random.uniform(
            bk, (1, dout), jnp.float32, -bound, bound)

    def w(name):
        return raw[name + "_w"].astype(weight_dtype)

    def b(name):
        return raw[name + "_b"]

    params = {
        "w1": w("fc1"), "b1": b("fc1"),
        "w2": w("fc2"), "b2": b("fc2"),
        "w3": w("fc3"), "b3": b("fc3"),
        # fused mu / log_var head
        "whead": jnp.concatenate([w("mu"), w("log_var")], axis=1),
        "bhead": jnp.concatenate([b("mu"), b("log_var")], axis=1),
        "w4": w("fc4"), "b4": b("fc4"),
        "w5": w("fc5"), "b5": b("fc5"),
        "w6": w("fc6"), "b6": b("fc6"),
        "w7": w("fc7"), "b7": b("fc7"),
    }

    # Priors exist in the module but are unused in forward(); kept for parity.
    params["pi_prior"] = jnp.ones((n_classes,), jnp.float32) / n_classes
    params["mu_prior"] = jnp.zeros((n_classes, latent_dim), jnp.float32)
    params["log_var_prior"] = jax.random.normal(
        keys[ki], (n_classes, latent_dim), jnp.float32)
    return params


def vade_forward_ref(x, eps, p):
    """Pure-JAX reference (same bf16-weight / f32-accumulate recipe)."""
    latent_dim = eps.shape[1]

    def lin(a, w, b):
        return jnp.dot(a.astype(w.dtype), w,
                       preferred_element_type=jnp.float32) + b

    h = jax.nn.relu(lin(x, p["w1"], p["b1"]))
    h = jax.nn.relu(lin(h, p["w2"], p["b2"]))
    h = jax.nn.relu(lin(h, p["w3"], p["b3"]))
    head = lin(h, p["whead"], p["bhead"])
    mu, log_var = head[:, :latent_dim], head[:, latent_dim:]
    z = mu + eps * jnp.exp(log_var / 2)
    d = jax.nn.relu(lin(z, p["w4"], p["b4"]))
    d = jax.nn.relu(lin(d, p["w5"], p["b5"]))
    d = jax.nn.relu(lin(d, p["w6"], p["b6"]))
    x_hat = lin(d, p["w7"], p["b7"])
    return x_hat, mu, log_var, z


if __name__ == "__main__":
    # Small shapes consistent with the module's MLP structure; batch chosen
    # to exercise the auto tile selection (tb=256 -> 2 parallel tiles).
    B = 512
    input_dim = 128
    hidden_dims = [128, 64]
    latent_dim = 16
    n_classes = 10

    key = jax.random.PRNGKey(0)
    kp, kx, ke = jax.random.split(key, 3)

    params = init_params(kp, input_dim, hidden_dims, latent_dim, n_classes)
    x = jax.random.normal(kx, (B, input_dim), jnp.float32)
    # reparameterization noise (torch.randn_like equivalent), passed explicitly
    eps = jax.random.normal(ke, (B, latent_dim), jnp.float32)

    outs = vade_forward(x, eps, params)
    jax.block_until_ready(outs)
    x_hat, mu, log_var, z = outs

    # verify against pure-JAX reference
    rx_hat, rmu, rlog_var, rz = vade_forward_ref(x, eps, params)
    assert x_hat.shape == (B, input_dim)
    assert mu.shape == log_var.shape == z.shape == (B, latent_dim)
    assert jnp.allclose(x_hat, rx_hat, atol=1e-2, rtol=1e-2), "x_hat mismatch"
    assert jnp.allclose(mu, rmu, atol=1e-2, rtol=1e-2), "mu mismatch"
    assert jnp.allclose(log_var, rlog_var, atol=1e-2, rtol=1e-2), "log_var mismatch"
    assert jnp.allclose(z, rz, atol=1e-2, rtol=1e-2), "z mismatch"

    print("KERNEL_OK")
</pallas_src>

<mosaic_0001>
module attributes {stable_mosaic.version = 11 : i64} {
  func.func @vade_forward_kernel(%arg0: i32, %arg1: memref<256x128xbf16, #tpu.memory_space<vmem>>, %arg2: memref<256x16xf32, #tpu.memory_space<vmem>>, %arg3: memref<128x128xbf16, #tpu.memory_space<vmem>>, %arg4: memref<128x128xbf16, #tpu.memory_space<vmem>>, %arg5: memref<128x64xbf16, #tpu.memory_space<vmem>>, %arg6: memref<64x32xbf16, #tpu.memory_space<vmem>>, %arg7: memref<16x64xbf16, #tpu.memory_space<vmem>>, %arg8: memref<64x128xbf16, #tpu.memory_space<vmem>>, %arg9: memref<128x128xbf16, #tpu.memory_space<vmem>>, %arg10: memref<128x128xbf16, #tpu.memory_space<vmem>>, %arg11: memref<1x1024xf32, #tpu.memory_space<vmem>>, %arg12: memref<256x128xf32, #tpu.memory_space<vmem>>, %arg13: memref<256x128xf32, #tpu.memory_space<vmem>>) attributes {dimension_semantics = [#tpu.dimension_semantics<parallel>], iteration_bounds = array<i64: 2>, scalar_prefetch = 0 : i64, scratch_operands = 0 : i64, tpu.core_type = #tpu.core_type<tc>, window_params = [{transform_indices = @transform_0, window_bounds = array<i64: 256, 128>}, {transform_indices = @transform_1, window_bounds = array<i64: 256, 16>}, {pipeline_mode = #tpu.pipeline_mode<synchronous>, transform_indices = @transform_2, window_bounds = array<i64: 128, 128>}, {pipeline_mode = #tpu.pipeline_mode<synchronous>, transform_indices = @transform_3, window_bounds = array<i64: 128, 128>}, {pipeline_mode = #tpu.pipeline_mode<synchronous>, transform_indices = @transform_4, window_bounds = array<i64: 128, 64>}, {pipeline_mode = #tpu.pipeline_mode<synchronous>, transform_indices = @transform_5, window_bounds = array<i64: 64, 32>}, {pipeline_mode = #tpu.pipeline_mode<synchronous>, transform_indices = @transform_6, window_bounds = array<i64: 16, 64>}, {pipeline_mode = #tpu.pipeline_mode<synchronous>, transform_indices = @transform_7, window_bounds = array<i64: 64, 128>}, {pipeline_mode = #tpu.pipeline_mode<synchronous>, transform_indices = @transform_8, window_bounds = array<i64: 128, 128>}, {pipeline_mode = #tpu.pipeline_mode<synchronous>, transform_indices = @transform_9, window_bounds = array<i64: 128, 128>}, {pipeline_mode = #tpu.pipeline_mode<synchronous>, transform_indices = @transform_10, window_bounds = array<i64: 1, 1024>}, {transform_indices = @transform_11, window_bounds = array<i64: 256, 128>}, {transform_indices = @transform_12, window_bounds = array<i64: 256, 128>}]} {
    %c0 = arith.constant 0 : index
    %c0_0 = arith.constant 0 : index
    %0 = vector.load %arg1[%c0, %c0_0] : memref<256x128xbf16, #tpu.memory_space<vmem>>, vector<256x128xbf16>
    %c0_1 = arith.constant 0 : index
    %c0_2 = arith.constant 0 : index
    %1 = vector.load %arg3[%c0_1, %c0_2] : memref<128x128xbf16, #tpu.memory_space<vmem>>, vector<128x128xbf16>
    %cst = arith.constant dense<0.000000e+00> : vector<256x128xf32>
    %2 = tpu.matmul %0, %1, %cst {dimension_numbers = #tpu.dot_dimension_numbers<[1], [0], [0], [1], [0, 0, 1, 1], [], []>} : vector<256x128xbf16>, vector<128x128xbf16>, vector<256x128xf32> -> vector<256x128xf32>
    %c0_3 = arith.constant 0 : index
    %c0_4 = arith.constant 0 : index
    %3 = vector.load %arg11[%c0_3, %c0_4] : memref<1x1024xf32, #tpu.memory_space<vmem>>, vector<1x128xf32>
    %4 = vector.broadcast %3 : vector<1x128xf32> to vector<256x128xf32>
    %5 = arith.addf %2, %4 : vector<256x128xf32>
    %cst_5 = arith.constant 0.000000e+00 : f32
    %6 = vector.broadcast %cst_5 : f32 to vector<256x128xf32>
    %7 = arith.maximumf %5, %6 : vector<256x128xf32>
    %8 = arith.truncf %7 : vector<256x128xf32> to vector<256x128xbf16>
    %c0_6 = arith.constant 0 : index
    %c0_7 = arith.constant 0 : index
    %9 = vector.load %arg4[%c0_6, %c0_7] : memref<128x128xbf16, #tpu.memory_space<vmem>>, vector<128x128xbf16>
    %cst_8 = arith.constant dense<0.000000e+00> : vector<256x128xf32>
    %10 = tpu.matmul %8, %9, %cst_8 {dimension_numbers = #tpu.dot_dimension_numbers<[1], [0], [0], [1], [0, 0, 1, 1], [], []>} : vector<256x128xbf16>, vector<128x128xbf16>, vector<256x128xf32> -> vector<256x128xf32>
    %c0_9 = arith.constant 0 : index
    %c128 = arith.constant 128 : index
    %11 = vector.load %arg11[%c0_9, %c128] : memref<1x1024xf32, #tpu.memory_space<vmem>>, vector<1x128xf32>
    %12 = vector.broadcast %11 : vector<1x128xf32> to vector<256x128xf32>
    %13 = arith.addf %10, %12 : vector<256x128xf32>
    %cst_10 = arith.constant 0.000000e+00 : f32
    %14 = vector.broadcast %cst_10 : f32 to vector<256x128xf32>
    %15 = arith.maximumf %13, %14 : vector<256x128xf32>
    %16 = arith.truncf %15 : vector<256x128xf32> to vector<256x128xbf16>
    %c0_11 = arith.constant 0 : index
    %c0_12 = arith.constant 0 : index
    %17 = vector.load %arg5[%c0_11, %c0_12] : memref<128x64xbf16, #tpu.memory_space<vmem>>, vector<128x64xbf16>
    %cst_13 = arith.constant dense<0.000000e+00> : vector<256x64xf32>
    %18 = tpu.matmul %16, %17, %cst_13 {dimension_numbers = #tpu.dot_dimension_numbers<[1], [0], [0], [1], [0, 0, 1, 1], [], []>} : vector<256x128xbf16>, vector<128x64xbf16>, vector<256x64xf32> -> vector<256x64xf32>
    %c0_14 = arith.constant 0 : index
    %c256 = arith.constant 256 : index
    %19 = vector.load %arg11[%c0_14, %c256] : memref<1x1024xf32, #tpu.memory_space<vmem>>, vector<1x64xf32>
    %20 = vector.broadcast %19 : vector<1x64xf32> to vector<256x64xf32>
    %21 = arith.addf %18, %20 : vector<256x64xf32>
    %cst_15 = arith.constant 0.000000e+00 : f32
    %22 = vector.broadcast %cst_15 : f32 to vector<256x64xf32>
    %23 = arith.maximumf %21, %22 : vector<256x64xf32>
    %24 = arith.truncf %23 : vector<256x64xf32> to vector<256x64xbf16>
    %c0_16 = arith.constant 0 : index
    %c0_17 = arith.constant 0 : index
    %25 = vector.load %arg6[%c0_16, %c0_17] : memref<64x32xbf16, #tpu.memory_space<vmem>>, vector<64x32xbf16>
    %cst_18 = arith.constant dense<0.000000e+00> : vector<256x32xf32>
    %26 = tpu.matmul %24, %25, %cst_18 {dimension_numbers = #tpu.dot_dimension_numbers<[1], [0], [0], [1], [0, 0, 1, 1], [], []>} : vector<256x64xbf16>, vector<64x32xbf16>, vector<256x32xf32> -> vector<256x32xf32>
    %c0_19 = arith.constant 0 : index
    %c384 = arith.constant 384 : index
    %27 = vector.load %arg11[%c0_19, %c384] : memref<1x1024xf32, #tpu.memory_space<vmem>>, vector<1x32xf32>
    %28 = vector.broadcast %27 : vector<1x32xf32> to vector<256x32xf32>
    %29 = arith.addf %26, %28 : vector<256x32xf32>
    %30 = vector.extract_strided_slice %29 {offsets = [0, 0], sizes = [256, 16], strides = [1, 1]} : vector<256x32xf32> to vector<256x16xf32>
    %31 = vector.extract_strided_slice %29 {offsets = [0, 16], sizes = [256, 16], strides = [1, 1]} : vector<256x32xf32> to vector<256x16xf32>
    %c0_20 = arith.constant 0 : index
    %c0_21 = arith.constant 0 : index
    %32 = vector.load %arg2[%c0_20, %c0_21] : memref<256x16xf32, #tpu.memory_space<vmem>>, vector<256x16xf32>
    %cst_22 = arith.constant 5.000000e-01 : f32
    %33 = vector.broadcast %cst_22 : f32 to vector<256x16xf32>
    %34 = arith.mulf %31, %33 : vector<256x16xf32>
    %35 = math.exp %34 : vector<256x16xf32>
    %36 = arith.mulf %32, %35 : vector<256x16xf32>
    %37 = arith.addf %30, %36 : vector<256x16xf32>
    %38 = arith.truncf %37 : vector<256x16xf32> to vector<256x16xbf16>
    %c0_23 = arith.constant 0 : index
    %c0_24 = arith.constant 0 : index
    %39 = vector.load %arg7[%c0_23, %c0_24] : memref<16x64xbf16, #tpu.memory_space<vmem>>, vector<16x64xbf16>
    %cst_25 = arith.constant dense<0.000000e+00> : vector<256x64xf32>
    %40 = tpu.matmul %38, %39, %cst_25 {dimension_numbers = #tpu.dot_dimension_numbers<[1], [0], [0], [1], [0, 0, 1, 1], [], []>} : vector<256x16xbf16>, vector<16x64xbf16>, vector<256x64xf32> -> vector<256x64xf32>
    %c0_26 = arith.constant 0 : index
    %c512 = arith.constant 512 : index
    %41 = vector.load %arg11[%c0_26, %c512] : memref<1x1024xf32, #tpu.memory_space<vmem>>, vector<1x64xf32>
    %42 = vector.broadcast %41 : vector<1x64xf32> to vector<256x64xf32>
    %43 = arith.addf %40, %42 : vector<256x64xf32>
    %cst_27 = arith.constant 0.000000e+00 : f32
    %44 = vector.broadcast %cst_27 : f32 to vector<256x64xf32>
    %45 = arith.maximumf %43, %44 : vector<256x64xf32>
    %46 = arith.truncf %45 : vector<256x64xf32> to vector<256x64xbf16>
    %c0_28 = arith.constant 0 : index
    %c0_29 = arith.constant 0 : index
    %47 = vector.load %arg8[%c0_28, %c0_29] : memref<64x128xbf16, #tpu.memory_space<vmem>>, vector<64x128xbf16>
    %cst_30 = arith.constant dense<0.000000e+00> : vector<256x128xf32>
    %48 = tpu.matmul %46, %47, %cst_30 {dimension_numbers = #tpu.dot_dimension_numbers<[1], [0], [0], [1], [0, 0, 1, 1], [], []>} : vector<256x64xbf16>, vector<64x128xbf16>, vector<256x128xf32> -> vector<256x128xf32>
    %c0_31 = arith.constant 0 : index
    %c640 = arith.constant 640 : index
    %49 = vector.load %arg11[%c0_31, %c640] : memref<1x1024xf32, #tpu.memory_space<vmem>>, vector<1x128xf32>
    %50 = vector.broadcast %49 : vector<1x128xf32> to vector<256x128xf32>
    %51 = arith.addf %48, %50 : vector<256x128xf32>
    %cst_32 = arith.constant 0.000000e+00 : f32
    %52 = vector.broadcast %cst_32 : f32 to vector<256x128xf32>
    %53 = arith.maximumf %51, %52 : vector<256x128xf32>
    %54 = arith.truncf %53 : vector<256x128xf32> to vector<256x128xbf16>
    %c0_33 = arith.constant 0 : index
    %c0_34 = arith.constant 0 : index
    %55 = vector.load %arg9[%c0_33, %c0_34] : memref<128x128xbf16, #tpu.memory_space<vmem>>, vector<128x128xbf16>
    %cst_35 = arith.constant dense<0.000000e+00> : vector<256x128xf32>
    %56 = tpu.matmul %54, %55, %cst_35 {dimension_numbers = #tpu.dot_dimension_numbers<[1], [0], [0], [1], [0, 0, 1, 1], [], []>} : vector<256x128xbf16>, vector<128x128xbf16>, vector<256x128xf32> -> vector<256x128xf32>
    %c0_36 = arith.constant 0 : index
    %c768 = arith.constant 768 : index
    %57 = vector.load %arg11[%c0_36, %c768] : memref<1x1024xf32, #tpu.memory_space<vmem>>, vector<1x128xf32>
    %58 = vector.broadcast %57 : vector<1x128xf32> to vector<256x128xf32>
    %59 = arith.addf %56, %58 : vector<256x128xf32>
    %cst_37 = arith.constant 0.000000e+00 : f32
    %60 = vector.broadcast %cst_37 : f32 to vector<256x128xf32>
    %61 = arith.maximumf %59, %60 : vector<256x128xf32>
    %62 = arith.truncf %61 : vector<256x128xf32> to vector<256x128xbf16>
    %c0_38 = arith.constant 0 : index
    %c0_39 = arith.constant 0 : index
    %63 = vector.load %arg10[%c0_38, %c0_39] : memref<128x128xbf16, #tpu.memory_space<vmem>>, vector<128x128xbf16>
    %cst_40 = arith.constant dense<0.000000e+00> : vector<256x128xf32>
    %64 = tpu.matmul %62, %63, %cst_40 {dimension_numbers = #tpu.dot_dimension_numbers<[1], [0], [0], [1], [0, 0, 1, 1], [], []>} : vector<256x128xbf16>, vector<128x128xbf16>, vector<256x128xf32> -> vector<256x128xf32>
    %c0_41 = arith.constant 0 : index
    %c896 = arith.constant 896 : index
    %65 = vector.load %arg11[%c0_41, %c896] : memref<1x1024xf32, #tpu.memory_space<vmem>>, vector<1x128xf32>
    %66 = vector.broadcast %65 : vector<1x128xf32> to vector<256x128xf32>
    %67 = arith.addf %64, %66 : vector<256x128xf32>
    %c0_42 = arith.constant 0 : index
    %c0_43 = arith.constant 0 : index
    %68 = vector.load %arg12[%c0_42, %c0_43] : memref<256x128xf32, #tpu.memory_space<vmem>>, vector<256x128xf32>
    tpu.vector_store %arg12[%c0_42, %c0_43], %67 {strides = array<i32>} : memref<256x128xf32, #tpu.memory_space<vmem>>, vector<256x128xf32>,
    %cst_44 = arith.constant 0.000000e+00 : f32
    %69 = vector.broadcast %cst_44 : f32 to vector<256x80xf32>
    %70 = tpu.concatenate %29, %37, %69 in 1 : vector<256x32xf32>, vector<256x16xf32>, vector<256x80xf32> -> vector<256x128xf32>
    %c0_45 = arith.constant 0 : index
    %c0_46 = arith.constant 0 : index
    %71 = vector.load %arg13[%c0_45, %c0_46] : memref<256x128xf32, #tpu.memory_space<vmem>>, vector<256x128xf32>
    tpu.vector_store %arg13[%c0_45, %c0_46], %70 {strides = array<i32>} : memref<256x128xf32, #tpu.memory_space<vmem>>, vector<256x128xf32>,
    return
  }
  func.func @transform_0(%arg0: i32) -> (i32, i32) {
    %c0_i32 = arith.constant 0 : i32
    %c0_i32_0 = arith.constant 0 : i32
    return %arg0, %c0_i32 : i32, i32
  }
  func.func @transform_1(%arg0: i32) -> (i32, i32) {
    %c0_i32 = arith.constant 0 : i32
    %c0_i32_0 = arith.constant 0 : i32
    return %arg0, %c0_i32 : i32, i32
  }
  func.func @transform_2(%arg0: i32) -> (i32, i32) {
    %c0_i32 = arith.constant 0 : i32
    %c0_i32_0 = arith.constant 0 : i32
    %c0_i32_1 = arith.constant 0 : i32
    return %c0_i32, %c0_i32_0 : i32, i32
  }
  func.func @transform_3(%arg0: i32) -> (i32, i32) {
    %c0_i32 = arith.constant 0 : i32
    %c0_i32_0 = arith.constant 0 : i32
    %c0_i32_1 = arith.constant 0 : i32
    return %c0_i32, %c0_i32_0 : i32, i32
  }
  func.func @transform_4(%arg0: i32) -> (i32, i32) {
    %c0_i32 = arith.constant 0 : i32
    %c0_i32_0 = arith.constant 0 : i32
    %c0_i32_1 = arith.constant 0 : i32
    return %c0_i32, %c0_i32_0 : i32, i32
  }
  func.func @transform_5(%arg0: i32) -> (i32, i32) {
    %c0_i32 = arith.constant 0 : i32
    %c0_i32_0 = arith.constant 0 : i32
    %c0_i32_1 = arith.constant 0 : i32
    return %c0_i32, %c0_i32_0 : i32, i32
  }
  func.func @transform_6(%arg0: i32) -> (i32, i32) {
    %c0_i32 = arith.constant 0 : i32
    %c0_i32_0 = arith.constant 0 : i32
    %c0_i32_1 = arith.constant 0 : i32
    return %c0_i32, %c0_i32_0 : i32, i32
  }
  func.func @transform_7(%arg0: i32) -> (i32, i32) {
    %c0_i32 = arith.constant 0 : i32
    %c0_i32_0 = arith.constant 0 : i32
    %c0_i32_1 = arith.constant 0 : i32
    return %c0_i32, %c0_i32_0 : i32, i32
  }
  func.func @transform_8(%arg0: i32) -> (i32, i32) {
    %c0_i32 = arith.constant 0 : i32
    %c0_i32_0 = arith.constant 0 : i32
    %c0_i32_1 = arith.constant 0 : i32
    return %c0_i32, %c0_i32_0 : i32, i32
  }
  func.func @transform_9(%arg0: i32) -> (i32, i32) {
    %c0_i32 = arith.constant 0 : i32
    %c0_i32_0 = arith.constant 0 : i32
    %c0_i32_1 = arith.constant 0 : i32
    return %c0_i32, %c0_i32_0 : i32, i32
  }
  func.func @transform_10(%arg0: i32) -> (i32, i32) {
    %c0_i32 = arith.constant 0 : i32
    %c0_i32_0 = arith.constant 0 : i32
    %c0_i32_1 = arith.constant 0 : i32
    return %c0_i32, %c0_i32_0 : i32, i32
  }
  func.func @transform_11(%arg0: i32) -> (i32, i32) {
    %c0_i32 = arith.constant 0 : i32
    %c0_i32_0 = arith.constant 0 : i32
    return %arg0, %c0_i32 : i32, i32
  }
  func.func @transform_12(%arg0: i32) -> (i32, i32) {
    %c0_i32 = arith.constant 0 : i32
    %c0_i32_0 = arith.constant 0 : i32
    return %arg0, %c0_i32 : i32, i32
  }
}

</mosaic_0001>

<bundles_post_ra>
// kernel: vade_forward.1
= control target key start
LH: loop header
LB: loop body
LE: loop exit
PB: predicated region body
PF: predicated region fallthrough
CT: control target
= control target key end

     0   :  { %s5458_s0 = inlined_call_operand.vmem [shape: bf16[512,128], index: 0, kind: input, shape index: {}]   ;;  %s5459_s1 = inlined_call_operand.vmem [shape: f32[512,16], index: 1, kind: input, shape index: {}]   ;;  %s5460_s2 = inlined_call_operand.vmem [shape: bf16[128,128], index: 2, kind: input, shape index: {}]   ;;  %s5461_s3 = inlined_call_operand.vmem [shape: bf16[128,128], index: 3, kind: input, shape index: {}]   ;;  %s5462_s4 = inlined_call_operand.vmem [shape: bf16[128,64], index: 4, kind: input, shape index: {}]   ;;  %s5463_s5 = inlined_call_operand.vmem [shape: bf16[64,32], index: 5, kind: input, shape index: {}]   ;;  %s5464_s6 = inlined_call_operand.vmem [shape: bf16[16,64], index: 6, kind: input, shape index: {}]   ;;  %s5465_s7 = inlined_call_operand.vmem [shape: bf16[64,128], index: 7, kind: input, shape index: {}]   ;;  %s5466_s8 = inlined_call_operand.vmem [shape: bf16[128,128], index: 8, kind: input, shape index: {}]   ;;  %s5467_s9 = inlined_call_operand.vmem [shape: bf16[128,128], index: 9, kind: input, shape index: {}]   ;;  %s5468_s10 = inlined_call_operand.vmem [shape: f32[1,1024], index: 10, kind: input, shape index: {}]   ;;  %s5469_s11 = inlined_call_operand.hbm [shape: f32[512,128], index: 11, kind: output, shape index: {0}]   ;;  %s5470_s12 = inlined_call_operand.vmem [shape: f32[512,128], index: 12, kind: output, shape index: {1}]  }
   0x1   :  { %5471 = sst [smem:[#allocation6_spill]] %s5458_s0 }
   0x2   :  { %18 = vsyncpa [#allocation3], 0 }
   0x3   :  { %20 = vsyncpa [#allocation3 + $0x1], 0  ;;  %s4439_s21 = smov 0   ;;  %s4441_s22 = smov 0  }
   0x4   :  { %s4443_s23 = smov 0   ;;  %s4445_s24 = smov 0  }
   0x5 LB: > { %s4460_s25 = sadd.s32 4294967295, %s4367_s24   ;;  %s3466_s26 = sadd.s32 4294967294, %s4367_s24   ;;  %s4367_s24 = sphi %s4445_s24, %s5480_s24   ;;  %s4363_s23 = sphi %s4443_s23, %s5479_s23   ;;  %s4359_s22 = sphi %s4441_s22, %s5478_s22   ;;  %s4355_s21 = sphi %s4439_s21, %s5477_s21  }
   0x6   : > { %s4464_s27 = sadd.s32 1, %s4367_s24   ;;  %s274_s28 = sadd.s32 1, %s4363_s23 }
   0x7   : > { %s271_s29 = ssub.s32 %s4367_s24, %s4464_s27  ;;  %p284_p0 = scmp.ne.s32.totalorder %s4363_s23, %s4359_s22 }
   0x8   : > { %p272_p1 = scmp.eq.s32.totalorder %s271_s29, 0  ;;  %p285_p2 = scmp.eq.s32.totalorder %s4460_s25, 1 }
   0x9   : > { %p290_p3 = scmp.ne.s32.totalorder %s4359_s22, %s4355_s21  ;;  %p291_p4 = scmp.eq.s32.totalorder %s3466_s26, 1 }
   0xa   : > { %s4475_s30 = scalar_select %p272_p1, %s4363_s23, %s274_s28  }
   0xb   : > { %p4477_p5 = por %p285_p2, %p284_p0  ;;  %p4481_p6 = por %p291_p4, %p290_p3 }
   0xc   : > { %5472 = sst [smem:[#allocation5_spill]] %s4475_s30  ;;  %p3469_p7 = scmp.ge.s32.totalorder %s4367_s24, 1 }
   0xd   : > { %p380_p8 = scmp.lt.s32.totalorder %s4367_s24, 3 }
   0xf   : > { %p381_p9 = pnand %p3469_p7, %p380_p8 }
  0x10   : > { %s3471_s17 = sshll.u32 (!%p381_p9), %s4460_s25, 5  ;;  %s5475_s0 = sld [smem:[#allocation6_spill]] (!%p381_p9) }
  0x11   : > { %384 = sbr.rel (%p381_p9) target bundleno = 1906 (0x772), region = 64  ;;  %p433_p10 = scmp.lt.s32.totalorder (!%p381_p9), %s3471_s17, 63 }
  0x12   : > { %s4369_s30 = smov (!%p381_p9), 112   ;;  %s4370_s15 = smov (!%p381_p9), 32  }
  0x13   : > { %s422_s26 = sand.u32 (!%p381_p9), 1, %s4359_s22  }
  0x16   : > { %v4178_v0 = vld [vmem:[%s5460_s2 + $0x38] sm:$0xff]   ;;  %v4179_v1 = vld [vmem:[%s5460_s2 + $0x30] sm:$0xff]   ;;  %s5482_s17 = smov (!%p433_p10, %s3471_s17), 63  ;;  %v4180_v2 = vld [vmem:[%s5460_s2 + $0x28] sm:$0xff]   ;;  %vm1459_vm0 = vcmask 523264   ;;  %vm2020_vm1 = vcmask 130048  }
  0x17   : > { %3781 = vmatprep.subr.bf16.mxu0 %v4178_v0  ;;  %s3472_s28 = sshll.u32 %s5482_s17, 2  ;;  %v4181_v3 = vld [vmem:[%s5460_s2 + $0x20] sm:$0xff]   ;;  %v4182_v5 = vld [vmem:[%s5460_s2 + $0x18] sm:$0xff]   ;;  %v4183_v6 = vld [vmem:[%s5460_s2 + $0x10] sm:$0xff]   ;;  %s3474_s20 = sshll.u32 %s5482_s17, 3  ;;  %vm3246_vm2 = vcmask 261120  }
  0x18   : > { %3782 = vmatpush3.bf16.msra.mxu0 %v4178_v0  ;;  %s4503_s16 = scalar_lea.vmem %s5475_s0, %s3472_s28  ;;  %v4184_v7 = vld [vmem:[%s5460_s2 + $0x8] sm:$0xff]   ;;  %v4185_v8 = vld [vmem:[%s5460_s2] sm:$0xff]   ;;  %v4202_v9 = vld [vmem:[%s5461_s3 + $0x38] sm:$0xff]   ;;  %s4897_s29 = scalar_lea.vmem %s5459_s1, %s3474_s20  ;;  %vm3279_vm3 = vcmask 392192  }
  0x19   : > { %3783 = vmatprep.subr.bf16.mxu0 %v4179_v1  ;;  %v4186_v4 = vld [vmem:[%s4503_s16] sm:$0xff]   ;;  %v4203_v10 = vld [vmem:[%s5461_s3 + $0x30] sm:$0xff]   ;;  %3829 = vmatprep.subr.bf16.mxu1 %v4202_v9  ;;  %v4187_v11 = vld [vmem:[%s4503_s16 + $0x8] sm:$0xff]   ;;  %s5028_s0 = scalar_lea.vmem %s5470_s12, %s3474_s20  ;;  %s3470_s28 = sshll.u32 %s422_s26, 8 }
  0x1a   : > { %3797 = vmatprep.mubr.bf16.mxu0 %v4186_v4  ;;  %3830 = vmatpush3.bf16.msra.mxu1 %v4202_v9  ;;  %v4204_v12 = vld [vmem:[%s5461_s3 + $0x28] sm:$0xff]   ;;  %v4188_v13 = vld [vmem:[%s4503_s16 + $0x10] sm:$0xff]   ;;  %v4205_v14 = vld [vmem:[%s5461_s3 + $0x20] sm:$0xff]   ;;  %s5342_s18 = scalar_lea.vmem [#allocation2], %s3470_s28  ;;  %s3603_s17 = sshll.u32 %s4460_s25, 12 }
  0x1b   : > { %3831 = vmatprep.subr.bf16.mxu1 %v4203_v10  ;;  %v4206_v15 = vld [vmem:[%s5461_s3 + $0x18] sm:$0xff]   ;;  %v4190_v17 = vld [vmem:[%s4503_s16 + $0x20] sm:$0xff]   ;;  %v4191_v18 = vld [vmem:[%s4503_s16 + $0x28] sm:$0xff]   ;;  %s3363_s20 = sshll.u32 %s5342_s18, 4  ;;  %s5418_s25 = scalar_lea.sflag [#allocation3], %s422_s26  ;;  %s5411_s20 = int_to_ptr.vmem [resolvable:$true] %s3363_s20 }
  0x1c   : > { %3784 = vmatpush3.bf16.msra.mxu0 %v4179_v1  ;;  %v4189_v16 = vld [vmem:[%s4503_s16 + $0x18] sm:$0xff]   ;;  %v4192_v19 = vld [vmem:[%s4503_s16 + $0x30] sm:$0xff]   ;;  %v4194_v21 = vld [vmem:[%s4503_s16 + $0x40] sm:$0xff]   ;;  %s4371_s28 = smov [#allocation2]  }
  0x1d   : > { %3785 = vmatprep.subr.bf16.mxu0 %v4180_v2  ;;  %v4193_v20 = vld [vmem:[%s4503_s16 + $0x38] sm:$0xff]   ;;  %v4195_v22 = vld [vmem:[%s4503_s16 + $0x48] sm:$0xff]   ;;  %v4196_v23 = vld [vmem:[%s4503_s16 + $0x50] sm:$0xff]  }
  0x1e   : > { %3832 = vmatpush3.bf16.msra.mxu1 %v4203_v10  ;;  %v4197_v24 = vld [vmem:[%s4503_s16 + $0x58] sm:$0xff]   ;;  %v4198_v25 = vld [vmem:[%s4503_s16 + $0x60] sm:$0xff]   ;;  %v4199_v26 = vld [vmem:[%s4503_s16 + $0x68] sm:$0xff]  }
  0x1f   : > { %3833 = vmatprep.subr.bf16.mxu1 %v4204_v12  ;;  %v4200_v27 = vld [vmem:[%s4503_s16 + $0x70] sm:$0xff]   ;;  %v4201_v28 = vld [vmem:[%s4503_s16 + $0x78] sm:$0xff]   ;;  %v4208_v30 = vld [vmem:[%s5461_s3 + $0x8] sm:$0xff]  }
  0x20   : > { %3786 = vmatpush3.bf16.msra.mxu0 %v4180_v2  ;;  %v4207_v29 = vld [vmem:[%s5461_s3 + $0x10] sm:$0xff]   ;;  %v4209_v31 = vld [vmem:[%s5461_s3] sm:$0xff]   ;;  %v4210_v32 = vld [vmem:[%s5462_s4 + $0x38] sm:$0xff]  }
  0x21   : > { %3787 = vmatprep.subr.bf16.mxu0 %v4181_v3  ;;  %v4211_v33 = vld [vmem:[%s5462_s4 + $0x30] sm:$0xff]   ;;  %v4212_v34 = vld [vmem:[%s5462_s4 + $0x28] sm:$0xff]   ;;  %v4213_v35 = vld [vmem:[%s5462_s4 + $0x20] sm:$0xff]  }
  0x22   : > { %3834 = vmatpush3.bf16.msra.mxu1 %v4204_v12  ;;  %v4214_v36 = vld [vmem:[%s5462_s4 + $0x18] sm:$0xff]   ;;  %v4215_v37 = vld [vmem:[%s5462_s4 + $0x10] sm:$0xff]   ;;  %v4216_v38 = vld [vmem:[%s5462_s4 + $0x8] sm:$0xff]  }
  0x23   : > { %3835 = vmatprep.subr.bf16.mxu1 %v4205_v14  ;;  %v4584_v41 = vld [vmem:[%s5468_s10] ss:$0 sm:$0xff] }
  0x24   : > { %3788 = vmatpush3.bf16.msra.mxu0 %v4181_v3 }
  0x25   : > { %3789 = vmatprep.subr.bf16.mxu0 %v4182_v5 }
  0x26   : > { %3836 = vmatpush3.bf16.msra.mxu1 %v4205_v14 }
  0x27   : > { %3837 = vmatprep.subr.bf16.mxu1 %v4206_v15 }
  0x28   : > { %3790 = vmatpush3.bf16.msra.mxu0 %v4182_v5 }
  0x29   : > { %3791 = vmatprep.subr.bf16.mxu0 %v4183_v6 }
  0x2a   : > { %3838 = vmatpush3.bf16.msra.mxu1 %v4206_v15 }
  0x2b   : > { %3839 = vmatprep.subr.bf16.mxu1 %v4207_v29 }
  0x2c   : > { %3792 = vmatpush3.bf16.msra.mxu0 %v4183_v6 }
  0x2d   : > { %3793 = vmatprep.subr.bf16.mxu0 %v4184_v7 }
  0x2e   : > { %3840 = vmatpush3.bf16.msra.mxu1 %v4207_v29 }
  0x2f   : > { %3841 = vmatprep.subr.bf16.mxu1 %v4208_v30 }
  0x30   : > { %3794 = vmatpush3.bf16.msra.mxu0 %v4184_v7 }
  0x31   : > { %3795 = vmatprep.subr.bf16.mxu0 %v4185_v8 }
  0x32   : > { %3842 = vmatpush3.bf16.msra.mxu1 %v4208_v30 }
  0x33   : > { %3843 = vmatprep.subr.bf16.mxu1 %v4209_v31 }
  0x34   : > { %3796 = vmatpush3.bf16.msra.mxu0 %v4185_v8 }
  0x35   : > { %3877 = vmatprep.subr.bf16.mxu0 %v4210_v32 }
  0x36   : > { %3844 = vmatpush3.bf16.msra.mxu1 %v4209_v31 }
  0x37   : > { %3798 = vmatmul.mubr.bf16.vlgmr.msra.gmra.mxu0 %v4187_v11 }
  0x38   : > { %3801 = vmatprep.mubr.bf16.mxu0 %v4188_v13  ;;  %3878 = vmatpush3.bf16.msra.mxu0 %v4210_v32 }
  0x39   : > { %3879 = vmatprep.subr.bf16.mxu0 %v4211_v33 }
  0x3c   : > { %3880 = vmatpush3.bf16.msra.mxu0 %v4211_v33 }
  0x3d   : > { %3881 = vmatprep.subr.bf16.mxu0 %v4212_v34 }
  0x3f   : > { %3802 = vmatmul.mubr.bf16.gmra.mxu0 %v4189_v16 }
  0x40   : > { %3805 = vmatprep.mubr.bf16.mxu0 %v4190_v17  ;;  %3882 = vmatpush3.bf16.msra.mxu0 %v4212_v34 }
  0x41   : > { %3883 = vmatprep.subr.bf16.mxu0 %v4213_v35 }
  0x44   : > { %3884 = vmatpush3.bf16.msra.mxu0 %v4213_v35 }
  0x45   : > { %3885 = vmatprep.subr.bf16.mxu0 %v4214_v36 }
  0x47   : > { %3806 = vmatmul.mubr.bf16.gmra.mxu0 %v4191_v18 }
  0x48   : > { %3809 = vmatprep.mubr.bf16.mxu0 %v4192_v19  ;;  %3886 = vmatpush3.bf16.msra.mxu0 %v4214_v36 }
  0x49   : > { %3887 = vmatprep.subr.bf16.mxu0 %v4215_v37 }
  0x4c   : > { %3888 = vmatpush3.bf16.msra.mxu0 %v4215_v37 }
  0x4d   : > { %3889 = vmatprep.subr.bf16.mxu0 %v4216_v38 }
  0x4f   : > { %3810 = vmatmul.mubr.bf16.gmra.mxu0 %v4193_v20 }
  0x50   : > { %3813 = vmatprep.mubr.bf16.mxu0 %v4194_v21  ;;  %3890 = vmatpush3.bf16.msra.mxu0 %v4216_v38 }
  0x57   : > { %3814 = vmatmul.mubr.bf16.gmra.mxu0 %v4195_v22 }
  0x58   : > { %3817 = vmatprep.mubr.bf16.mxu0 %v4196_v23 }
  0x5f   : > { %3818 = vmatmul.mubr.bf16.gmra.mxu0 %v4197_v24 }
  0x60   : > { %3821 = vmatprep.mubr.bf16.mxu0 %v4198_v25 }
  0x67   : > { %3822 = vmatmul.mubr.bf16.gmra.mxu0 %v4199_v26 }
  0x68   : > { %3825 = vmatprep.mubr.bf16.mxu0 %v4200_v27 }
  0x6f   : > { %3826 = vmatmul.mubr.bf16.gmra.mxu0 %v4201_v28 }
  0xf7   : > { %v3799_v39 = vpop.f32.mrf.mxu0 }
  0xf8   : > { %v694_v45 = vadd.f32 %v3799_v39, %v4584_v41 }
  0xf9   : > { %v685_v40 = vpop.f32.mrf.mxu0 }
  0xfa   : > { %v686_v43 = vadd.f32 %v4584_v41, %v685_v40  ;;  %v814_v52 = vmax.f32 %v694_v45, 0.0 }
  0xfb   : > { %v3800_v42 = vpop.f32.mrf.mxu0 }
  0xfc   : > { %v697_v44 = vadd.f32 %v3800_v42, %v4584_v41  ;;  %v812_v50 = vmax.f32 %v686_v43, 0.0 }
  0xfd   : > { %v688_v46 = vpop.f32.mrf.mxu0 }
  0xfe   : > { %v689_v47 = vadd.f32 %v4584_v41, %v688_v46  ;;  %v815_v48 = vmax.f32 %v697_v44, 0.0 }
  0xff   : > { %v3803_v49 = vpop.f32.mrf.mxu0 }
 0x100   : > { %v813_v51 = vmax.f32 %v689_v47, 0.0  ;;  %v845_v55 = vpack.c.bf16 %v815_v48, %v814_v52  ;;  %v710_v59 = vadd.f32 %v3803_v49, %v4584_v41 }
 0x101   : > { %v701_v53 = vpop.f32.mrf.mxu0 }
 0x102   : > { %v844_v54 = vpack.c.bf16 %v813_v51, %v812_v50  ;;  %v702_v57 = vadd.f32 %v4584_v41, %v701_v53  ;;  %v818_v2 = vmax.f32 %v710_v59, 0.0 }
 0x103   : > { %v3804_v56 = vpop.f32.mrf.mxu0 }
 0x104   : > { %v713_v58 = vadd.f32 %v3804_v56, %v4584_v41  ;;  %3845 = vmatprep.mubr.bf16.mxu1 %v844_v54  ;;  %v816_v0 = vmax.f32 %v702_v57, 0.0 }
 0x105   : > { %v704_v60 = vpop.f32.mrf.mxu0  ;;  %3846 = vmatmul.mubr.bf16.vlgmr.msra.gmra.mxu1 %v845_v55 }
 0x106   : > { %v705_v61 = vadd.f32 %v4584_v41, %v704_v60  ;;  %v819_v62 = vmax.f32 %v713_v58, 0.0 }
 0x107   : > { %v3807_v63 = vpop.f32.mrf.mxu0 }
 0x108   : > { %v817_v1 = vmax.f32 %v705_v61, 0.0  ;;  %v847_v5 = vpack.c.bf16 %v819_v62, %v818_v2  ;;  %v726_v9 = vadd.f32 %v3807_v63, %v4584_v41 }
 0x109   : > { %v717_v3 = vpop.f32.mrf.mxu0 }
 0x10a   : > { %v846_v4 = vpack.c.bf16 %v817_v1, %v816_v0  ;;  %v718_v7 = vadd.f32 %v4584_v41, %v717_v3  ;;  %v822_v16 = vmax.f32 %v726_v9, 0.0 }
 0x10b   : > { %v3808_v6 = vpop.f32.mrf.mxu0 }
 0x10c   : > { %v729_v8 = vadd.f32 %v3808_v6, %v4584_v41  ;;  %3849 = vmatprep.mubr.bf16.mxu1 %v846_v4  ;;  %v820_v14 = vmax.f32 %v718_v7, 0.0 }
 0x10d   : > { %v720_v10 = vpop.f32.mrf.mxu0  ;;  %3850 = vmatmul.mubr.bf16.gmra.mxu1 %v847_v5 }
 0x10e   : > { %v721_v11 = vadd.f32 %v4584_v41, %v720_v10  ;;  %v823_v12 = vmax.f32 %v729_v8, 0.0 }
 0x10f   : > { %v3811_v13 = vpop.f32.mrf.mxu0 }
 0x110   : > { %v821_v15 = vmax.f32 %v721_v11, 0.0  ;;  %v849_v19 = vpack.c.bf16 %v823_v12, %v822_v16  ;;  %v742_v23 = vadd.f32 %v3811_v13, %v4584_v41 }
 0x111   : > { %v733_v17 = vpop.f32.mrf.mxu0 }
 0x112   : > { %v848_v18 = vpack.c.bf16 %v821_v15, %v820_v14  ;;  %v734_v21 = vadd.f32 %v4584_v41, %v733_v17  ;;  %v826_v30 = vmax.f32 %v742_v23, 0.0 }
 0x113   : > { %v3812_v20 = vpop.f32.mrf.mxu0 }
 0x114   : > { %v745_v22 = vadd.f32 %v3812_v20, %v4584_v41  ;;  %3853 = vmatprep.mubr.bf16.mxu1 %v848_v18  ;;  %v824_v28 = vmax.f32 %v734_v21, 0.0 }
 0x115   : > { %v736_v24 = vpop.f32.mrf.mxu0  ;;  %3854 = vmatmul.mubr.bf16.gmra.mxu1 %v849_v19 }
 0x116   : > { %v737_v25 = vadd.f32 %v4584_v41, %v736_v24  ;;  %v827_v26 = vmax.f32 %v745_v22, 0.0 }
 0x117   : > { %v3815_v27 = vpop.f32.mrf.mxu0 }
 0x118   : > { %v825_v29 = vmax.f32 %v737_v25, 0.0  ;;  %v851_v33 = vpack.c.bf16 %v827_v26, %v826_v30  ;;  %v758_v37 = vadd.f32 %v3815_v27, %v4584_v41  ;;  %v4217_v25 = vld [vmem:[%s5462_s4] sm:$0xff]   ;;  %v4218_v26 = vld [vmem:[%s5463_s5 + $0x18] sm:$0xff]   ;;  %v4220_v27 = vld [vmem:[%s5463_s5 + $0x8] sm:$0xff]  }
 0x119   : > { %v749_v31 = vpop.f32.mrf.mxu0  ;;  %3891 = vmatprep.subr.bf16.mxu0 %v4217_v25  ;;  %3925 = vmatprep.subr.bf16.mxu1 %v4218_v26 }
 0x11a   : > { %v850_v32 = vpack.c.bf16 %v825_v29, %v824_v28  ;;  %v750_v35 = vadd.f32 %v4584_v41, %v749_v31  ;;  %v830_v45 = vmax.f32 %v758_v37, 0.0  ;;  %3892 = vmatpush3.bf16.msra.mxu0 %v4217_v25  ;;  %3926 = vmatpush3.bf16.msra.mxu1 %v4218_v26  ;;  %v4221_v28 = vld [vmem:[%s5463_s5] sm:$0xff]  }
 0x11b   : > { %v3816_v34 = vpop.f32.mrf.mxu0  ;;  %v4636_v31 = vld [vmem:[%s5468_s10 + $0x1] ss:$0 sm:$0xff] }
 0x11c   : > { %v761_v36 = vadd.f32 %v3816_v34, %v4584_v41  ;;  %3857 = vmatprep.mubr.bf16.mxu1 %v850_v32  ;;  %v828_v43 = vmax.f32 %v750_v35, 0.0 }
 0x11d   : > { %v752_v38 = vpop.f32.mrf.mxu0  ;;  %3858 = vmatmul.mubr.bf16.gmra.mxu1 %v851_v33 }
 0x11e   : > { %v753_v39 = vadd.f32 %v4584_v41, %v752_v38  ;;  %v831_v40 = vmax.f32 %v761_v36, 0.0 }
 0x11f   : > { %v3819_v42 = vpop.f32.mrf.mxu0 }
 0x120   : > { %v829_v44 = vmax.f32 %v753_v39, 0.0  ;;  %v853_v48 = vpack.c.bf16 %v831_v40, %v830_v45  ;;  %v774_v52 = vadd.f32 %v3819_v42, %v4584_v41 }
 0x121   : > { %v765_v46 = vpop.f32.mrf.mxu0 }
 0x122   : > { %v852_v47 = vpack.c.bf16 %v829_v44, %v828_v43  ;;  %v766_v50 = vadd.f32 %v4584_v41, %v765_v46  ;;  %v834_v59 = vmax.f32 %v774_v52, 0.0 }
 0x123   : > { %v3820_v49 = vpop.f32.mrf.mxu0 }
 0x124   : > { %v777_v51 = vadd.f32 %v3820_v49, %v4584_v41  ;;  %3861 = vmatprep.mubr.bf16.mxu1 %v852_v47  ;;  %v832_v57 = vmax.f32 %v766_v50, 0.0 }
 0x125   : > { %v768_v53 = vpop.f32.mrf.mxu0  ;;  %3862 = vmatmul.mubr.bf16.gmra.mxu1 %v853_v48 }
 0x126   : > { %v769_v54 = vadd.f32 %v4584_v41, %v768_v53  ;;  %v835_v55 = vmax.f32 %v777_v51, 0.0 }
 0x127   : > { %v3823_v56 = vpop.f32.mrf.mxu0 }
 0x128   : > { %v833_v58 = vmax.f32 %v769_v54, 0.0  ;;  %v855_v62 = vpack.c.bf16 %v835_v55, %v834_v59  ;;  %v790_v2 = vadd.f32 %v3823_v56, %v4584_v41 }
 0x129   : > { %v781_v60 = vpop.f32.mrf.mxu0 }
 0x12a   : > { %v854_v61 = vpack.c.bf16 %v833_v58, %v832_v57  ;;  %v782_v0 = vadd.f32 %v4584_v41, %v781_v60  ;;  %v838_v9 = vmax.f32 %v790_v2, 0.0 }
 0x12b   : > { %v3824_v63 = vpop.f32.mrf.mxu0 }
 0x12c   : > { %v793_v1 = vadd.f32 %v3824_v63, %v4584_v41  ;;  %3865 = vmatprep.mubr.bf16.mxu1 %v854_v61  ;;  %v836_v7 = vmax.f32 %v782_v0, 0.0 }
 0x12d   : > { %v784_v3 = vpop.f32.mrf.mxu0  ;;  %3866 = vmatmul.mubr.bf16.gmra.mxu1 %v855_v62 }
 0x12e   : > { %v785_v4 = vadd.f32 %v4584_v41, %v784_v3  ;;  %v839_v5 = vmax.f32 %v793_v1, 0.0 }
 0x12f   : > { %v3827_v6 = vpop.f32.mrf.mxu0 }
 0x130   : > { %v837_v8 = vmax.f32 %v785_v4, 0.0  ;;  %v857_v12 = vpack.c.bf16 %v839_v5, %v838_v9  ;;  %v806_v16 = vadd.f32 %v3827_v6, %v4584_v41 }
 0x131   : > { %v797_v10 = vpop.f32.mrf.mxu0 }
 0x132   : > { %v856_v11 = vpack.c.bf16 %v837_v8, %v836_v7  ;;  %v798_v14 = vadd.f32 %v4584_v41, %v797_v10  ;;  %v842_v22 = vmax.f32 %v806_v16, 0.0 }
 0x133   : > { %v3828_v13 = vpop.f32.mrf.mxu0 }
 0x134   : > { %v809_v15 = vadd.f32 %v3828_v13, %v4584_v41  ;;  %3869 = vmatprep.mubr.bf16.mxu1 %v856_v11  ;;  %v840_v20 = vmax.f32 %v798_v14, 0.0 }
 0x135   : > { %v800_v17 = vpop.f32.mrf.mxu0  ;;  %3870 = vmatmul.mubr.bf16.gmra.mxu1 %v857_v12 }
 0x136   : > { %v801_v18 = vadd.f32 %v4584_v41, %v800_v17  ;;  %v843_v19 = vmax.f32 %v809_v15, 0.0  ;;  %v4219_v41 = vld [vmem:[%s5463_s5 + $0x10] sm:$0xff]  }
 0x137   : > { %3927 = vmatprep.subr.bf16.mxu1 %v4219_v41 }
 0x138   : > { %v841_v21 = vmax.f32 %v801_v18, 0.0  ;;  %v859_v24 = vpack.c.bf16 %v843_v19, %v842_v22  ;;  %3928 = vmatpush3.bf16.msra.mxu1 %v4219_v41 }
 0x139   : > { %3929 = vmatprep.subr.bf16.mxu1 %v4220_v27 }
 0x13a   : > { %v858_v23 = vpack.c.bf16 %v841_v21, %v840_v20 }
 0x13c   : > { %3873 = vmatprep.mubr.bf16.mxu1 %v858_v23  ;;  %3930 = vmatpush3.bf16.msra.mxu1 %v4220_v27 }
 0x13d   : > { %3874 = vmatmul.mubr.bf16.gmra.mxu1 %v859_v24  ;;  %3931 = vmatprep.subr.bf16.mxu1 %v4221_v28 }
 0x140   : > { %3932 = vmatpush3.bf16.msra.mxu1 %v4221_v28 }
 0x1c5   : > { %v3847_v29 = vpop.f32.mrf.mxu1 }
 0x1c6   : > { %v974_v35 = vadd.f32 %v3847_v29, %v4636_v31 }
 0x1c7   : > { %v965_v30 = vpop.f32.mrf.mxu1 }
 0x1c8   : > { %v966_v33 = vadd.f32 %v4636_v31, %v965_v30  ;;  %v1094_v43 = vmax.f32 %v974_v35, 0.0 }
 0x1c9   : > { %v3848_v32 = vpop.f32.mrf.mxu1 }
 0x1ca   : > { %v977_v34 = vadd.f32 %v3848_v32, %v4636_v31  ;;  %v1092_v40 = vmax.f32 %v966_v33, 0.0 }
 0x1cb   : > { %v968_v36 = vpop.f32.mrf.mxu1 }
 0x1cc   : > { %v969_v37 = vadd.f32 %v4636_v31, %v968_v36  ;;  %v1095_v38 = vmax.f32 %v977_v34, 0.0 }
 0x1cd   : > { %v3851_v39 = vpop.f32.mrf.mxu1 }
 0x1ce   : > { %v1093_v42 = vmax.f32 %v969_v37, 0.0  ;;  %v1125_v46 = vpack.c.bf16 %v1095_v38, %v1094_v43  ;;  %v990_v50 = vadd.f32 %v3851_v39, %v4636_v31 }
 0x1cf   : > { %v981_v44 = vpop.f32.mrf.mxu1 }
 0x1d0   : > { %v1124_v45 = vpack.c.bf16 %v1093_v42, %v1092_v40  ;;  %v982_v48 = vadd.f32 %v4636_v31, %v981_v44  ;;  %v1098_v57 = vmax.f32 %v990_v50, 0.0 }
 0x1d1   : > { %v3852_v47 = vpop.f32.mrf.mxu1 }
 0x1d2   : > { %v993_v49 = vadd.f32 %v3852_v47, %v4636_v31  ;;  %3893 = vmatprep.mubr.bf16.mxu0 %v1124_v45  ;;  %v1096_v55 = vmax.f32 %v982_v48, 0.0 }
 0x1d3   : > { %v984_v51 = vpop.f32.mrf.mxu1  ;;  %3894 = vmatmul.mubr.bf16.vlgmr.msra.gmra.mxu0 %v1125_v46 }
 0x1d4   : > { %v985_v52 = vadd.f32 %v4636_v31, %v984_v51  ;;  %v1099_v53 = vmax.f32 %v993_v49, 0.0 }
 0x1d5   : > { %v3855_v54 = vpop.f32.mrf.mxu1 }
 0x1d6   : > { %v1097_v56 = vmax.f32 %v985_v52, 0.0  ;;  %v1127_v60 = vpack.c.bf16 %v1099_v53, %v1098_v57  ;;  %v1006_v0 = vadd.f32 %v3855_v54, %v4636_v31 }
 0x1d7   : > { %v997_v58 = vpop.f32.mrf.mxu1 }
 0x1d8   : > { %v1126_v59 = vpack.c.bf16 %v1097_v56, %v1096_v55  ;;  %v998_v62 = vadd.f32 %v4636_v31, %v997_v58  ;;  %v1102_v7 = vmax.f32 %v1006_v0, 0.0 }
 0x1d9   : > { %v3856_v61 = vpop.f32.mrf.mxu1 }
 0x1da   : > { %v1009_v63 = vadd.f32 %v3856_v61, %v4636_v31  ;;  %3897 = vmatprep.mubr.bf16.mxu0 %v1126_v59  ;;  %v1100_v5 = vmax.f32 %v998_v62, 0.0 }
 0x1db   : > { %v1000_v1 = vpop.f32.mrf.mxu1  ;;  %3898 = vmatmul.mubr.bf16.gmra.mxu0 %v1127_v60 }
 0x1dc   : > { %v1001_v2 = vadd.f32 %v4636_v31, %v1000_v1  ;;  %v1103_v3 = vmax.f32 %v1009_v63, 0.0 }
 0x1dd   : > { %v3859_v4 = vpop.f32.mrf.mxu1 }
 0x1de   : > { %v1101_v6 = vmax.f32 %v1001_v2, 0.0  ;;  %v1129_v10 = vpack.c.bf16 %v1103_v3, %v1102_v7  ;;  %v1022_v14 = vadd.f32 %v3859_v4, %v4636_v31 }
 0x1df   : > { %v1013_v8 = vpop.f32.mrf.mxu1 }
 0x1e0   : > { %v1128_v9 = vpack.c.bf16 %v1101_v6, %v1100_v5  ;;  %v1014_v12 = vadd.f32 %v4636_v31, %v1013_v8  ;;  %v1106_v21 = vmax.f32 %v1022_v14, 0.0 }
 0x1e1   : > { %v3860_v11 = vpop.f32.mrf.mxu1 }
 0x1e2   : > { %v1025_v13 = vadd.f32 %v3860_v11, %v4636_v31  ;;  %3901 = vmatprep.mubr.bf16.mxu0 %v1128_v9  ;;  %v1104_v19 = vmax.f32 %v1014_v12, 0.0 }
 0x1e3   : > { %v1016_v15 = vpop.f32.mrf.mxu1  ;;  %3902 = vmatmul.mubr.bf16.gmra.mxu0 %v1129_v10 }
 0x1e4   : > { %v1017_v16 = vadd.f32 %v4636_v31, %v1016_v15  ;;  %v1107_v17 = vmax.f32 %v1025_v13, 0.0 }
 0x1e5   : > { %v3863_v18 = vpop.f32.mrf.mxu1 }
 0x1e6   : > { %v1105_v20 = vmax.f32 %v1017_v16, 0.0  ;;  %v1131_v24 = vpack.c.bf16 %v1107_v17, %v1106_v21  ;;  %v1038_v27 = vadd.f32 %v3863_v18, %v4636_v31  ;;  %v4673_v18 = vld [vmem:[%s5468_s10 + $0x2] ss:$0 sm:$0xff] }
 0x1e7   : > { %v1029_v22 = vpop.f32.mrf.mxu1 }
 0x1e8   : > { %v1130_v23 = vpack.c.bf16 %v1105_v20, %v1104_v19  ;;  %v1030_v26 = vadd.f32 %v4636_v31, %v1029_v22  ;;  %v1110_v35 = vmax.f32 %v1038_v27, 0.0 }
 0x1e9   : > { %v3864_v25 = vpop.f32.mrf.mxu1 }
 0x1ea   : > { %v1041_v41 = vadd.f32 %v3864_v25, %v4636_v31  ;;  %3905 = vmatprep.mubr.bf16.mxu0 %v1130_v23  ;;  %v1108_v33 = vmax.f32 %v1030_v26, 0.0 }
 0x1eb   : > { %v1032_v28 = vpop.f32.mrf.mxu1  ;;  %3906 = vmatmul.mubr.bf16.gmra.mxu0 %v1131_v24 }
 0x1ec   : > { %v1033_v29 = vadd.f32 %v4636_v31, %v1032_v28  ;;  %v1111_v30 = vmax.f32 %v1041_v41, 0.0 }
 0x1ed   : > { %v3867_v32 = vpop.f32.mrf.mxu1 }
 0x1ee   : > { %v1109_v34 = vmax.f32 %v1033_v29, 0.0  ;;  %v1133_v38 = vpack.c.bf16 %v1111_v30, %v1110_v35  ;;  %v1054_v43 = vadd.f32 %v3867_v32, %v4636_v31 }
 0x1ef   : > { %v1045_v36 = vpop.f32.mrf.mxu1 }
 0x1f0   : > { %v1132_v37 = vpack.c.bf16 %v1109_v34, %v1108_v33  ;;  %v1046_v40 = vadd.f32 %v4636_v31, %v1045_v36  ;;  %v1114_v50 = vmax.f32 %v1054_v43, 0.0 }
 0x1f1   : > { %v3868_v39 = vpop.f32.mrf.mxu1 }
 0x1f2   : > { %v1057_v42 = vadd.f32 %v3868_v39, %v4636_v31  ;;  %3909 = vmatprep.mubr.bf16.mxu0 %v1132_v37  ;;  %v1112_v48 = vmax.f32 %v1046_v40, 0.0 }
 0x1f3   : > { %v1048_v44 = vpop.f32.mrf.mxu1  ;;  %3910 = vmatmul.mubr.bf16.gmra.mxu0 %v1133_v38 }
 0x1f4   : > { %v1049_v45 = vadd.f32 %v4636_v31, %v1048_v44  ;;  %v1115_v46 = vmax.f32 %v1057_v42, 0.0 }
 0x1f5   : > { %v3871_v47 = vpop.f32.mrf.mxu1 }
 0x1f6   : > { %v1113_v49 = vmax.f32 %v1049_v45, 0.0  ;;  %v1135_v53 = vpack.c.bf16 %v1115_v46, %v1114_v50  ;;  %v1070_v57 = vadd.f32 %v3871_v47, %v4636_v31 }
 0x1f7   : > { %v1061_v51 = vpop.f32.mrf.mxu1 }
 0x1f8   : > { %v1134_v52 = vpack.c.bf16 %v1113_v49, %v1112_v48  ;;  %v1062_v55 = vadd.f32 %v4636_v31, %v1061_v51  ;;  %v1118_v0 = vmax.f32 %v1070_v57, 0.0 }
 0x1f9   : > { %v3872_v54 = vpop.f32.mrf.mxu1 }
 0x1fa   : > { %v1073_v56 = vadd.f32 %v3872_v54, %v4636_v31  ;;  %3913 = vmatprep.mubr.bf16.mxu0 %v1134_v52  ;;  %v1116_v62 = vmax.f32 %v1062_v55, 0.0 }
 0x1fb   : > { %v1064_v58 = vpop.f32.mrf.mxu1  ;;  %3914 = vmatmul.mubr.bf16.gmra.mxu0 %v1135_v53 }
 0x1fc   : > { %v1065_v59 = vadd.f32 %v4636_v31, %v1064_v58  ;;  %v1119_v60 = vmax.f32 %v1073_v56, 0.0 }
 0x1fd   : > { %v3875_v61 = vpop.f32.mrf.mxu1 }
 0x1fe   : > { %v1117_v63 = vmax.f32 %v1065_v59, 0.0  ;;  %v1137_v3 = vpack.c.bf16 %v1119_v60, %v1118_v0  ;;  %v1086_v7 = vadd.f32 %v3875_v61, %v4636_v31 }
 0x1ff   : > { %v1077_v1 = vpop.f32.mrf.mxu1 }
 0x200   : > { %v1136_v2 = vpack.c.bf16 %v1117_v63, %v1116_v62  ;;  %v1078_v5 = vadd.f32 %v4636_v31, %v1077_v1  ;;  %v1122_v13 = vmax.f32 %v1086_v7, 0.0 }
 0x201   : > { %v3876_v4 = vpop.f32.mrf.mxu1 }
 0x202   : > { %v1089_v6 = vadd.f32 %v3876_v4, %v4636_v31  ;;  %3917 = vmatprep.mubr.bf16.mxu0 %v1136_v2  ;;  %v1120_v11 = vmax.f32 %v1078_v5, 0.0 }
 0x203   : > { %v1080_v8 = vpop.f32.mrf.mxu1  ;;  %3918 = vmatmul.mubr.bf16.gmra.mxu0 %v1137_v3 }
 0x204   : > { %v1081_v9 = vadd.f32 %v4636_v31, %v1080_v8  ;;  %v1123_v10 = vmax.f32 %v1089_v6, 0.0 }
 0x206   : > { %v1121_v12 = vmax.f32 %v1081_v9, 0.0  ;;  %v1139_v15 = vpack.c.bf16 %v1123_v10, %v1122_v13 }
 0x208   : > { %v1138_v14 = vpack.c.bf16 %v1121_v12, %v1120_v11 }
 0x20a   : > { %3921 = vmatprep.mubr.bf16.mxu0 %v1138_v14 }
 0x20b   : > { %3922 = vmatmul.mubr.bf16.gmra.mxu0 %v1139_v15 }
 0x293   : > { %v3895_v16 = vpop.f32.mrf.mxu0 }
 0x294   : > { %v1254_v21 = vadd.f32 %v3895_v16, %v4673_v18 }
 0x295   : > { %v1245_v17 = vpop.f32.mrf.mxu0 }
 0x296   : > { %v1246_v20 = vadd.f32 %v4673_v18, %v1245_v17  ;;  %v1374_v27 = vmax.f32 %v1254_v21, 0.0 }
 0x297   : > { %v3896_v19 = vpop.f32.mrf.mxu0 }
 0x298   : > { %v1257_v31 = vadd.f32 %v3896_v19, %v4673_v18  ;;  %v1372_v26 = vmax.f32 %v1246_v20, 0.0 }
 0x299   : > { %v1248_v22 = vpop.f32.mrf.mxu0 }
 0x29a   : > { %v1249_v23 = vadd.f32 %v4673_v18, %v1248_v22  ;;  %v1375_v24 = vmax.f32 %v1257_v31, 0.0 }
 0x29b   : > { %v3899_v25 = vpop.f32.mrf.mxu0 }
 0x29c   : > { %v1373_v41 = vmax.f32 %v1249_v23, 0.0  ;;  %v1405_v30 = vpack.c.bf16 %v1375_v24, %v1374_v27  ;;  %v1270_v35 = vadd.f32 %v3899_v25, %v4673_v18 }
 0x29d   : > { %v1261_v28 = vpop.f32.mrf.mxu0 }
 0x29e   : > { %v1404_v29 = vpack.c.bf16 %v1373_v41, %v1372_v26  ;;  %v1262_v33 = vadd.f32 %v4673_v18, %v1261_v28  ;;  %v1378_v43 = vmax.f32 %v1270_v35, 0.0 }
 0x29f   : > { %v3900_v32 = vpop.f32.mrf.mxu0 }
 0x2a0   : > { %v1273_v34 = vadd.f32 %v3900_v32, %v4673_v18  ;;  %3933 = vmatprep.mubr.msk.bf16.mxu1 %vm1459_vm0, %v1404_v29  ;;  %v1376_v40 = vmax.f32 %v1262_v33, 0.0 }
 0x2a1   : > { %v1264_v36 = vpop.f32.mrf.mxu0  ;;  %3934 = vmatmul.mubr.msk.bf16.vlgmr.msra.gmra.mxu1 %vm1459_vm0, %v1405_v30 }
 0x2a2   : > { %v1265_v37 = vadd.f32 %v4673_v18, %v1264_v36  ;;  %v1379_v38 = vmax.f32 %v1273_v34, 0.0 }
 0x2a3   : > { %v3903_v39 = vpop.f32.mrf.mxu0 }
 0x2a4   : > { %v1377_v42 = vmax.f32 %v1265_v37, 0.0  ;;  %v1407_v46 = vpack.c.bf16 %v1379_v38, %v1378_v43  ;;  %v1286_v50 = vadd.f32 %v3903_v39, %v4673_v18 }
 0x2a5   : > { %v1277_v44 = vpop.f32.mrf.mxu0 }
 0x2a6   : > { %v1406_v45 = vpack.c.bf16 %v1377_v42, %v1376_v40  ;;  %v1278_v48 = vadd.f32 %v4673_v18, %v1277_v44  ;;  %v1382_v57 = vmax.f32 %v1286_v50, 0.0 }
 0x2a7   : > { %v3904_v47 = vpop.f32.mrf.mxu0 }
 0x2a8   : > { %v1289_v49 = vadd.f32 %v3904_v47, %v4673_v18  ;;  %3937 = vmatprep.mubr.msk.bf16.mxu1 %vm1459_vm0, %v1406_v45  ;;  %v1380_v55 = vmax.f32 %v1278_v48, 0.0 }
 0x2a9   : > { %v1280_v51 = vpop.f32.mrf.mxu0  ;;  %3938 = vmatmul.mubr.msk.bf16.gmra.mxu1 %vm1459_vm0, %v1407_v46 }
 0x2aa   : > { %v1281_v52 = vadd.f32 %v4673_v18, %v1280_v51  ;;  %v1383_v53 = vmax.f32 %v1289_v49, 0.0 }
 0x2ab   : > { %v3907_v54 = vpop.f32.mrf.mxu0 }
 0x2ac   : > { %v1381_v56 = vmax.f32 %v1281_v52, 0.0  ;;  %v1409_v60 = vpack.c.bf16 %v1383_v53, %v1382_v57  ;;  %v1302_v0 = vadd.f32 %v3907_v54, %v4673_v18 }
 0x2ad   : > { %v1293_v58 = vpop.f32.mrf.mxu0 }
 0x2ae   : > { %v1408_v59 = vpack.c.bf16 %v1381_v56, %v1380_v55  ;;  %v1294_v62 = vadd.f32 %v4673_v18, %v1293_v58  ;;  %v1386_v7 = vmax.f32 %v1302_v0, 0.0 }
 0x2af   : > { %v3908_v61 = vpop.f32.mrf.mxu0 }
 0x2b0   : > { %v1305_v63 = vadd.f32 %v3908_v61, %v4673_v18  ;;  %3941 = vmatprep.mubr.msk.bf16.mxu1 %vm1459_vm0, %v1408_v59  ;;  %v1384_v5 = vmax.f32 %v1294_v62, 0.0 }
 0x2b1   : > { %v1296_v1 = vpop.f32.mrf.mxu0  ;;  %3942 = vmatmul.mubr.msk.bf16.gmra.mxu1 %vm1459_vm0, %v1409_v60 }
 0x2b2   : > { %v1297_v2 = vadd.f32 %v4673_v18, %v1296_v1  ;;  %v1387_v3 = vmax.f32 %v1305_v63, 0.0 }
 0x2b3   : > { %v3911_v4 = vpop.f32.mrf.mxu0 }
 0x2b4   : > { %v1385_v6 = vmax.f32 %v1297_v2, 0.0  ;;  %v1411_v10 = vpack.c.bf16 %v1387_v3, %v1386_v7  ;;  %v1318_v14 = vadd.f32 %v3911_v4, %v4673_v18  ;;  %v4222_v2 = vld [vmem:[%s5464_s6] sm:$0xff]  }
 0x2b5   : > { %v1309_v8 = vpop.f32.mrf.mxu0  ;;  %3965 = vmatprep.subr.bf16.mxu0 %v4222_v2 }
 0x2b6   : > { %v1410_v9 = vpack.c.bf16 %v1385_v6, %v1384_v5  ;;  %v1310_v12 = vadd.f32 %v4673_v18, %v1309_v8  ;;  %v1390_v21 = vmax.f32 %v1318_v14, 0.0  ;;  %3966 = vmatpush3.bf16.msra.mxu0 %v4222_v2 }
 0x2b7   : > { %v3912_v11 = vpop.f32.mrf.mxu0 }
 0x2b8   : > { %v1321_v13 = vadd.f32 %v3912_v11, %v4673_v18  ;;  %3945 = vmatprep.mubr.msk.bf16.mxu1 %vm1459_vm0, %v1410_v9  ;;  %v1388_v20 = vmax.f32 %v1310_v12, 0.0 }
 0x2b9   : > { %v1312_v15 = vpop.f32.mrf.mxu0  ;;  %3946 = vmatmul.mubr.msk.bf16.gmra.mxu1 %vm1459_vm0, %v1411_v10 }
 0x2ba   : > { %v1313_v16 = vadd.f32 %v4673_v18, %v1312_v15  ;;  %v1391_v17 = vmax.f32 %v1321_v13, 0.0 }
 0x2bb   : > { %v3915_v19 = vpop.f32.mrf.mxu0 }
 0x2bc   : > { %v1389_v31 = vmax.f32 %v1313_v16, 0.0  ;;  %v1413_v24 = vpack.c.bf16 %v1391_v17, %v1390_v21  ;;  %v1334_v27 = vadd.f32 %v3915_v19, %v4673_v18 }
 0x2bd   : > { %v1325_v22 = vpop.f32.mrf.mxu0 }
 0x2be   : > { %v1412_v23 = vpack.c.bf16 %v1389_v31, %v1388_v20  ;;  %v1326_v26 = vadd.f32 %v4673_v18, %v1325_v22  ;;  %v1394_v35 = vmax.f32 %v1334_v27, 0.0 }
 0x2bf   : > { %v3916_v25 = vpop.f32.mrf.mxu0 }
 0x2c0   : > { %v1337_v41 = vadd.f32 %v3916_v25, %v4673_v18  ;;  %3949 = vmatprep.mubr.msk.bf16.mxu1 %vm1459_vm0, %v1412_v23  ;;  %v1392_v33 = vmax.f32 %v1326_v26, 0.0 }
 0x2c1   : > { %v1328_v28 = vpop.f32.mrf.mxu0  ;;  %3950 = vmatmul.mubr.msk.bf16.gmra.mxu1 %vm1459_vm0, %v1413_v24 }
 0x2c2   : > { %v1329_v29 = vadd.f32 %v4673_v18, %v1328_v28  ;;  %v1395_v30 = vmax.f32 %v1337_v41, 0.0 }
 0x2c3   : > { %v3919_v32 = vpop.f32.mrf.mxu0 }
 0x2c4   : > { %v1393_v34 = vmax.f32 %v1329_v29, 0.0  ;;  %v1415_v38 = vpack.c.bf16 %v1395_v30, %v1394_v35  ;;  %v1350_v43 = vadd.f32 %v3919_v32, %v4673_v18 }
 0x2c5   : > { %v1341_v36 = vpop.f32.mrf.mxu0 }
 0x2c6   : > { %v1414_v37 = vpack.c.bf16 %v1393_v34, %v1392_v33  ;;  %v1342_v40 = vadd.f32 %v4673_v18, %v1341_v36  ;;  %v1398_v50 = vmax.f32 %v1350_v43, 0.0 }
 0x2c7   : > { %v3920_v39 = vpop.f32.mrf.mxu0 }
 0x2c8   : > { %v1353_v42 = vadd.f32 %v3920_v39, %v4673_v18  ;;  %3953 = vmatprep.mubr.msk.bf16.mxu1 %vm1459_vm0, %v1414_v37  ;;  %v1396_v48 = vmax.f32 %v1342_v40, 0.0 }
 0x2c9   : > { %v1344_v44 = vpop.f32.mrf.mxu0  ;;  %3954 = vmatmul.mubr.msk.bf16.gmra.mxu1 %vm1459_vm0, %v1415_v38 }
 0x2ca   : > { %v1345_v45 = vadd.f32 %v4673_v18, %v1344_v44  ;;  %v1399_v46 = vmax.f32 %v1353_v42, 0.0 }
 0x2cb   : > { %v3923_v47 = vpop.f32.mrf.mxu0 }
 0x2cc   : > { %v1397_v49 = vmax.f32 %v1345_v45, 0.0  ;;  %v1417_v53 = vpack.c.bf16 %v1399_v46, %v1398_v50  ;;  %v1366_v57 = vadd.f32 %v3923_v47, %v4673_v18 }
 0x2cd   : > { %v1357_v51 = vpop.f32.mrf.mxu0 }
 0x2ce   : > { %v1416_v52 = vpack.c.bf16 %v1397_v49, %v1396_v48  ;;  %v1358_v55 = vadd.f32 %v4673_v18, %v1357_v51  ;;  %v1402_v63 = vmax.f32 %v1366_v57, 0.0 }
 0x2cf   : > { %v3924_v54 = vpop.f32.mrf.mxu0 }
 0x2d0   : > { %v1369_v56 = vadd.f32 %v3924_v54, %v4673_v18  ;;  %3957 = vmatprep.mubr.msk.bf16.mxu1 %vm1459_vm0, %v1416_v52  ;;  %v1400_v61 = vmax.f32 %v1358_v55, 0.0 }
 0x2d1   : > { %v1360_v58 = vpop.f32.mrf.mxu0  ;;  %3958 = vmatmul.mubr.msk.bf16.gmra.mxu1 %vm1459_vm0, %v1417_v53 }
 0x2d2   : > { %v1361_v59 = vadd.f32 %v4673_v18, %v1360_v58  ;;  %v1403_v60 = vmax.f32 %v1369_v56, 0.0  ;;  %v4729_v18 = vld [vmem:[%s5468_s10 + $0x3] ss:$0 sm:$0xff] }
 0x2d4   : > { %v1401_v62 = vmax.f32 %v1361_v59, 0.0  ;;  %v1419_v1 = vpack.c.bf16 %v1403_v60, %v1402_v63 }
 0x2d6   : > { %v1418_v0 = vpack.c.bf16 %v1401_v62, %v1400_v61 }
 0x2d8   : > { %3961 = vmatprep.mubr.msk.bf16.mxu1 %vm1459_vm0, %v1418_v0 }
 0x2d9   : > { %3962 = vmatmul.mubr.msk.bf16.gmra.mxu1 %vm1459_vm0, %v1419_v1 }
 0x361   : > { %v3935_v3 = vpop.f32.mrf.mxu1 }
 0x362   : > { %v4732_v4 = vadd.f32 %v3935_v3, %v4729_v18 }
 0x363   : > { %v1542_v5 = vpop.f32.mrf.mxu1 }
 0x364   : > { %v1703_v6 = vmul.f32 0.5, %v4732_v4  ;;  %v4736_v7 = vadd.f32 %v4729_v18, %v1542_v5 }
 0x365   : > { %v3936_v8 = vpop.f32.mrf.mxu1 }
 0x366   : > { %v1737_v9 = vmul.f32 1.442695, %v1703_v6  ;;  %v1701_v10 = vmul.f32 0.5, %v4736_v7  ;;  %v4740_v11 = vadd.f32 %v3936_v8, %v4729_v18 }
 0x367   : > { %v1545_v12 = vpop.f32.mrf.mxu1 }
 0x368   : > { %4243 = vpow2.f32 %v1737_v9  ;;  %v1733_v13 = vmul.f32 1.442695, %v1701_v10  ;;  %v1704_v14 = vmul.f32 0.5, %v4740_v11  ;;  %v4744_v15 = vadd.f32 %v4729_v18, %v1545_v12 }
 0x369   : > { %v3939_v16 = vpop.f32.mrf.mxu1 }
 0x36a   : > { %4245 = vpow2.f32 %v1733_v13  ;;  %v1739_v17 = vmul.f32 1.442695, %v1704_v14  ;;  %v1702_v19 = vmul.f32 0.5, %v4744_v15  ;;  %v4748_v20 = vadd.f32 %v3939_v16, %v4729_v18 }
 0x36b   : > { %v1558_v31 = vpop.f32.mrf.mxu1 }
 0x36c   : > { %4247 = vpow2.f32 %v1739_v17  ;;  %v1735_v21 = vmul.f32 1.442695, %v1702_v19  ;;  %v4751_v22 = vadd.f32 %v4729_v18, %v1558_v31  ;;  %v1707_v23 = vmul.f32 0.5, %v4748_v20 }
 0x36d   : > { %v3940_v24 = vpop.f32.mrf.mxu1 }
 0x36e   : > { %4249 = vpow2.f32 %v1735_v21  ;;  %v1705_v25 = vmul.f32 0.5, %v4751_v22  ;;  %v4756_v26 = vadd.f32 %v3940_v24, %v4729_v18  ;;  %v1745_v29 = vmul.f32 1.442695, %v1707_v23 }
 0x36f   : > { %v1561_v41 = vpop.f32.mrf.mxu1 }
 0x370   : > { %v1741_v27 = vmul.f32 1.442695, %v1705_v25  ;;  %v4759_v28 = vadd.f32 %v4729_v18, %v1561_v41  ;;  %v1708_v30 = vmul.f32 0.5, %v4756_v26 }
 0x371   : > { %v3943_v32 = vpop.f32.mrf.mxu1 }
 0x372   : > { %4251 = vpow2.f32 %v1741_v27  ;;  %v1706_v33 = vmul.f32 0.5, %v4759_v28  ;;  %v4764_v34 = vadd.f32 %v3943_v32, %v4729_v18  ;;  %v1747_v39 = vmul.f32 1.442695, %v1708_v30 }
 0x373   : > { %v1574_v35 = vpop.f32.mrf.mxu1  ;;  %4253 = vpow2.f32 %v1745_v29 }
 0x374   : > { %v1743_v36 = vmul.f32 1.442695, %v1706_v33  ;;  %v4767_v37 = vadd.f32 %v4729_v18, %v1574_v35  ;;  %v1711_v40 = vmul.f32 0.5, %v4764_v34 }
 0x375   : > { %v4244_v38 = vpop.eup %4243  ;;  %v3944_v42 = vpop.f32.mrf.mxu1 }
 0x376   : > { %4255 = vpow2.f32 %v1743_v36  ;;  %v1709_v43 = vmul.f32 0.5, %v4767_v37  ;;  %v4772_v44 = vadd.f32 %v3944_v42, %v4729_v18  ;;  %1833 = vrot.lane.b32.xlu1 %v4244_v38, %s4369_s30  ;;  %v1753_v50 = vmul.f32 1.442695, %v1711_v40 }
 0x377   : > { %v4246_v45 = vpop.eup %4245  ;;  %v1577_v46 = vpop.f32.mrf.mxu1  ;;  %4257 = vpow2.f32 %v1747_v39 }
 0x378   : > { %v1749_v47 = vmul.f32 1.442695, %v1709_v43  ;;  %v4776_v48 = vadd.f32 %v4729_v18, %v1577_v46  ;;  %1829 = vrot.lane.b32.xlu0 %v4246_v45, %s4369_s30  ;;  %v1712_v51 = vmul.f32 0.5, %v4772_v44 }
 0x379   : > { %v4248_v49 = vpop.eup %4247  ;;  %v3947_v52 = vpop.f32.mrf.mxu1 }
 0x37a   : > { %4259 = vpow2.f32 %v1749_v47  ;;  %v1710_v53 = vmul.f32 0.5, %v4776_v48  ;;  %v4782_v54 = vadd.f32 %v3947_v52, %v4729_v18  ;;  %1835 = vrot.lane.b32.xlu1 %v4248_v49, %s4369_s30  ;;  %v1755_v59 = vmul.f32 1.442695, %v1712_v51 }
 0x37b   : > { %v4250_v55 = vpop.eup %4249  ;;  %v1590_v56 = vpop.f32.mrf.mxu1  ;;  %4261 = vpow2.f32 %v1753_v50 }
 0x37c   : > { %v1751_v57 = vmul.f32 1.442695, %v1710_v53  ;;  %v4786_v58 = vadd.f32 %v4729_v18, %v1590_v56  ;;  %1831 = vrot.lane.b32.xlu0 %v4250_v55, %s4369_s30  ;;  %v1715_v60 = vmul.f32 0.5, %v4782_v54 }
 0x37d   : > { %v3948_v61 = vpop.f32.mrf.mxu1 }
 0x37e   : > { %4263 = vpow2.f32 %v1751_v57  ;;  %v1713_v62 = vmul.f32 0.5, %v4786_v58  ;;  %v4792_v63 = vadd.f32 %v3948_v61, %v4729_v18  ;;  %v1761_v5 = vmul.f32 1.442695, %v1715_v60 }
 0x37f   : > { %v4252_v0 = vpop.eup %4251  ;;  %v1593_v1 = vpop.f32.mrf.mxu1  ;;  %4265 = vpow2.f32 %v1755_v59 }
 0x380   : > { %v1757_v2 = vmul.f32 1.442695, %v1713_v62  ;;  %v4795_v3 = vadd.f32 %v4729_v18, %v1593_v1  ;;  %1837 = vrot.lane.b32.xlu0 %v4252_v0, %s4369_s30  ;;  %v1716_v6 = vmul.f32 0.5, %v4792_v63  ;;  %v4254_v9 = vpop.eup %4253 }
 0x381   : > { %v3951_v8 = vpop.f32.mrf.mxu1 }
 0x382   : > { %4267 = vpow2.f32 %v1757_v2  ;;  %v1714_v10 = vmul.f32 0.5, %v4795_v3  ;;  %v4801_v12 = vadd.f32 %v3951_v8, %v4729_v18  ;;  %v1763_v19 = vmul.f32 1.442695, %v1716_v6 }
 0x383   : > { %v4256_v13 = vpop.eup %4255  ;;  %v1606_v14 = vpop.f32.mrf.mxu1  ;;  %4269 = vpow2.f32 %v1761_v5 }
 0x384   : > { %v1759_v16 = vmul.f32 1.442695, %v1714_v10  ;;  %v4804_v17 = vadd.f32 %v4729_v18, %v1606_v14  ;;  %1839 = vrot.lane.b32.xlu1 %v4256_v13, %s4369_s30  ;;  %1841 = vrot.lane.b32.xlu0 %v4254_v9, %s4369_s30  ;;  %v1719_v31 = vmul.f32 0.5, %v4801_v12  ;;  %v4258_v23 = vpop.eup %4257 }
 0x385   : > { %v3952_v21 = vpop.f32.mrf.mxu1 }
 0x386   : > { %4271 = vpow2.f32 %v1759_v16  ;;  %v1717_v24 = vmul.f32 0.5, %v4804_v17  ;;  %v4811_v25 = vadd.f32 %v3952_v21, %v4729_v18  ;;  %v1769_v32 = vmul.f32 1.442695, %v1719_v31 }
 0x387   : > { %v4260_v41 = vpop.eup %4259  ;;  %v1609_v27 = vpop.f32.mrf.mxu1  ;;  %4273 = vpow2.f32 %v1763_v19 }
 0x388   : > { %v1765_v29 = vmul.f32 1.442695, %v1717_v24  ;;  %v4814_v30 = vadd.f32 %v4729_v18, %v1609_v27  ;;  %1843 = vrot.lane.b32.xlu1 %v4258_v23, %s4369_s30  ;;  %1845 = vrot.lane.b32.xlu0 %v4260_v41, %s4369_s30  ;;  %v1720_v33 = vmul.f32 0.5, %v4811_v25  ;;  %v4262_v36 = vpop.eup %4261 }
 0x389   : > { %v3955_v35 = vpop.f32.mrf.mxu1 }
 0x38a   : > { %4275 = vpow2.f32 %v1765_v29  ;;  %v1718_v38 = vmul.f32 0.5, %v4814_v30  ;;  %v4821_v39 = vadd.f32 %v3955_v35, %v4729_v18  ;;  %v1771_v46 = vmul.f32 1.442695, %v1720_v33 }
 0x38b   : > { %v4264_v40 = vpop.eup %4263  ;;  %v1622_v42 = vpop.f32.mrf.mxu1  ;;  %4277 = vpow2.f32 %v1769_v32 }
 0x38c   : > { %v1767_v43 = vmul.f32 1.442695, %v1718_v38  ;;  %v4824_v45 = vadd.f32 %v4729_v18, %v1622_v42  ;;  %1847 = vrot.lane.b32.xlu1 %v4264_v40, %s4369_s30  ;;  %1849 = vrot.lane.b32.xlu0 %v4262_v36, %s4369_s30  ;;  %v1723_v47 = vmul.f32 0.5, %v4821_v39  ;;  %v4266_v50 = vpop.eup %4265 }
 0x38d   : > { %v3956_v49 = vpop.f32.mrf.mxu1 }
 0x38e   : > { %4279 = vpow2.f32 %v1767_v43  ;;  %v1721_v51 = vmul.f32 0.5, %v4824_v45  ;;  %v4831_v52 = vadd.f32 %v3956_v49, %v4729_v18  ;;  %v1777_v59 = vmul.f32 1.442695, %v1723_v47 }
 0x38f   : > { %v4268_v53 = vpop.eup %4267  ;;  %v1625_v55 = vpop.f32.mrf.mxu1  ;;  %4281 = vpow2.f32 %v1771_v46 }
 0x390   : > { %v1773_v56 = vmul.f32 1.442695, %v1721_v51  ;;  %v4834_v57 = vadd.f32 %v4729_v18, %v1625_v55  ;;  %1851 = vrot.lane.b32.xlu1 %v4266_v50, %s4369_s30  ;;  %1853 = vrot.lane.b32.xlu0 %v4268_v53, %s4369_s30  ;;  %v1724_v60 = vmul.f32 0.5, %v4831_v52  ;;  %v4270_v62 = vpop.eup %4269 }
 0x391   : > { %v3959_v61 = vpop.f32.mrf.mxu1 }
 0x392   : > { %4283 = vpow2.f32 %v1773_v56  ;;  %v1722_v0 = vmul.f32 0.5, %v4834_v57  ;;  %v4841_v1 = vadd.f32 %v3959_v61, %v4729_v18  ;;  %v1779_v9 = vmul.f32 1.442695, %v1724_v60 }
 0x393   : > { %v4272_v2 = vpop.eup %4271  ;;  %v1638_v5 = vpop.f32.mrf.mxu1  ;;  %4285 = vpow2.f32 %v1777_v59 }
 0x394   : > { %v1775_v6 = vmul.f32 1.442695, %v1722_v0  ;;  %v4844_v8 = vadd.f32 %v4729_v18, %v1638_v5  ;;  %1855 = vrot.lane.b32.xlu1 %v4272_v2, %s4369_s30  ;;  %1857 = vrot.lane.b32.xlu0 %v4270_v62, %s4369_s30  ;;  %v1727_v10 = vmul.f32 0.5, %v4841_v1  ;;  %v4274_v14 = vpop.eup %4273 }
 0x395   : > { %v3960_v13 = vpop.f32.mrf.mxu1 }
 0x396   : > { %4287 = vpow2.f32 %v1775_v6  ;;  %v1725_v16 = vmul.f32 0.5, %v4844_v8  ;;  %v4851_v19 = vadd.f32 %v3960_v13, %v4729_v18  ;;  %v1785_v41 = vmul.f32 1.442695, %v1727_v10 }
 0x397   : > { %v4276_v31 = vpop.eup %4275  ;;  %v1641_v21 = vpop.f32.mrf.mxu1  ;;  %4289 = vpow2.f32 %v1779_v9 }
 0x398   : > { %v1781_v23 = vmul.f32 1.442695, %v1725_v16  ;;  %v4854_v24 = vadd.f32 %v4729_v18, %v1641_v21  ;;  %1859 = vrot.lane.b32.xlu1 %v4274_v14, %s4369_s30  ;;  %1861 = vrot.lane.b32.xlu0 %v4276_v31, %s4369_s30  ;;  %v1728_v27 = vmul.f32 0.5, %v4851_v19  ;;  %v4278_v32 = vpop.eup %4277 }
 0x399   : > { %v3963_v29 = vpop.f32.mrf.mxu1 }
 0x39a   : > { %4291 = vpow2.f32 %v1781_v23  ;;  %v1726_v33 = vmul.f32 0.5, %v4854_v24  ;;  %v4861_v35 = vadd.f32 %v3963_v29, %v4729_v18  ;;  %v1787_v43 = vmul.f32 1.442695, %v1728_v27  ;;  %v1669_v29 = vld [vmem:[%s4897_s29] sm:$0xff] }
 0x39b   : > { %v4280_v36 = vpop.eup %4279  ;;  %v1654_v38 = vpop.f32.mrf.mxu1  ;;  %4293 = vpow2.f32 %v1785_v41  ;;  %v1671_v41 = vld [vmem:[%s4897_s29 + $0x10] sm:$0xff] }
 0x39c   : > { %v1783_v40 = vmul.f32 1.442695, %v1726_v33  ;;  %v4864_v42 = vadd.f32 %v4729_v18, %v1654_v38  ;;  %1863 = vrot.lane.b32.xlu1 %v4280_v36, %s4369_s30  ;;  %1865 = vrot.lane.b32.xlu0 %v4278_v32, %s4369_s30  ;;  %v1731_v46 = vmul.f32 0.5, %v4861_v35  ;;  %v4282_v49 = vpop.eup %4281  ;;  %v1672_v36 = vld [vmem:[%s4897_s29 + $0x18] sm:$0xff] }
 0x39d   : > { %v3964_v47 = vpop.f32.mrf.mxu1 }
 0x39e   : > { %4295 = vpow2.f32 %v1783_v40  ;;  %v1729_v50 = vmul.f32 0.5, %v4864_v42  ;;  %v4871_v51 = vadd.f32 %v3964_v47, %v4729_v18  ;;  %v1793_v60 = vmul.f32 1.442695, %v1731_v46  ;;  %v1670_v46 = vld [vmem:[%s4897_s29 + $0x8] sm:$0xff] }
 0x39f   : > { %v4284_v53 = vpop.eup %4283  ;;  %v1657_v55 = vpop.f32.mrf.mxu1  ;;  %4297 = vpow2.f32 %v1787_v43 }
 0x3a0   : > { %v1789_v56 = vmul.f32 1.442695, %v1729_v50  ;;  %v4874_v59 = vadd.f32 %v4729_v18, %v1657_v55  ;;  %1867 = vrot.lane.b32.xlu1 %v4282_v49, %s4369_s30  ;;  %1869 = vrot.lane.b32.xlu0 %v4284_v53, %s4369_s30  ;;  %v4286_v61 = vpop.eup %4285  ;;  %v1732_v62 = vmul.f32 0.5, %v4871_v51 }
 0x3a2   : > { %4299 = vpow2.f32 %v1789_v56  ;;  %v1730_v0 = vmul.f32 0.5, %v4874_v59  ;;  %v1795_v6 = vmul.f32 1.442695, %v1732_v62 }
 0x3a3   : > { %v4288_v2 = vpop.eup %4287  ;;  %4301 = vpow2.f32 %v1793_v60  ;;  %v1673_v60 = vld [vmem:[%s4897_s29 + $0x20] sm:$0xff] }
 0x3a4   : > { %v1791_v5 = vmul.f32 1.442695, %v1730_v0  ;;  %1871 = vrot.lane.b32.xlu1 %v4288_v2, %s4369_s30  ;;  %1873 = vrot.lane.b32.xlu0 %v4286_v61, %s4369_s30  ;;  %v4290_v18 = vpop.eup %4289  ;;  %v1674_v2 = vld [vmem:[%s4897_s29 + $0x28] sm:$0xff] }
 0x3a6   : > { %4303 = vpow2.f32 %v1791_v5  ;;  %v1675_v5 = vld [vmem:[%s4897_s29 + $0x30] sm:$0xff] }
 0x3a7   : > { %v4292_v9 = vpop.eup %4291  ;;  %4305 = vpow2.f32 %v1795_v6 }
 0x3a8   : > { %1875 = vrot.lane.b32.xlu1 %v4290_v18, %s4369_s30  ;;  %1877 = vrot.lane.b32.xlu0 %v4292_v9, %s4369_s30  ;;  %v4294_v10 = vpop.eup %4293 }
 0x3ab   : > { %v4296_v13 = vpop.eup %4295 }
 0x3ac   : > { %1879 = vrot.lane.b32.xlu1 %v4296_v13, %s4369_s30  ;;  %1881 = vrot.lane.b32.xlu0 %v4294_v10, %s4369_s30  ;;  %v4298_v14 = vpop.eup %4297 }
 0x3af   : > { %v4300_v16 = vpop.eup %4299 }
 0x3b0   : > { %1883 = vrot.lane.b32.xlu1 %v4298_v14, %s4369_s30  ;;  %1885 = vrot.lane.b32.xlu0 %v4300_v16, %s4369_s30  ;;  %v4302_v31 = vpop.eup %4301  ;;  %v1676_v14 = vld [vmem:[%s4897_s29 + $0x38] sm:$0xff] }
 0x3b3   : > { %v4304_v21 = vpop.eup %4303 }
 0x3b4   : > { %1887 = vrot.lane.b32.xlu1 %v4304_v21, %s4369_s30  ;;  %1889 = vrot.lane.b32.xlu0 %v4302_v31, %s4369_s30  ;;  %v4306_v23 = vpop.eup %4305 }
 0x3b8   : > { %1891 = vrot.lane.b32.xlu1 %v4306_v23, %s4369_s30  ;;  %s4307_s30 = scalar_lea.vmem %s5411_s20, 4096 }
 0x3b9   : > { %p4308_p11 = scmp.ne.s32.totalorder %s5411_s20, %s4307_s30 }
 0x3bb   : > { %p4309_p12 = pnand %p4308_p11, %p4477_p5 }
 0x3bd   : > { %p4310_p13 = pneg %p4309_p12 }
 0x3e8   : > { %v1834_v27 = vpop.permute.xlu1 %1833 }
 0x3e9   : > { %v1927_v32 = vmul.f32 %v1834_v27, %v1671_v41  ;;  %v1677_v41 = vld [vmem:[%s4897_s29 + $0x40] sm:$0xff] }
 0x3ea   : > { %v1830_v33 = vpop.permute.xlu0 %1829 }
 0x3eb   : > { %v1959_v38 = vadd.f32 %v1927_v32, %v4732_v4  ;;  %v1925_v40 = vmul.f32 %v1830_v33, %v1669_v29  ;;  %v1678_v33 = vld [vmem:[%s4897_s29 + $0x48] sm:$0xff] }
 0x3ec   : > { %v1836_v43 = vpop.permute.xlu1 %1835 }
 0x3ed   : > { %v1928_v47 = vmul.f32 %v1836_v43, %v1672_v36  ;;  %3154 = vrot.lane.b32.xlu0 %v1959_v38, %s4370_s15  ;;  %v1957_v50 = vadd.f32 %v1925_v40, %v4736_v7  ;;  %v1679_v36 = vld [vmem:[%s4897_s29 + $0x50] sm:$0xff] }
 0x3ee   : > { %v1832_v49 = vpop.permute.xlu0 %1831 }
 0x3ef   : > { %v1960_v53 = vadd.f32 %v1928_v47, %v4740_v11  ;;  %v1926_v55 = vmul.f32 %v1832_v49, %v1670_v46 }
 0x3f1   : > { %v1958_v56 = vadd.f32 %v1926_v55, %v4744_v15  ;;  %3156 = vrot.lane.b32.xlu1 %v1960_v53, %s4370_s15  ;;  %3150 = vrot.lane.b32.xlu0 %v1957_v50, %s4370_s15  ;;  %v1990_v0 = vpack.c.bf16 %v1960_v53, %v1959_v38  ;;  %v1680_v53 = vld [vmem:[%s4897_s29 + $0x58] sm:$0xff] }
 0x3f2   : > { %v1838_v61 = vpop.permute.xlu0 %1837 }
 0x3f3   : > { %v1989_v62 = vpack.c.bf16 %v1958_v56, %v1957_v50  ;;  %v1929_v18 = vmul.f32 %v1838_v61, %v1673_v60 }
 0x3f5   : > { %3152 = vrot.lane.b32.xlu1 %v1958_v56, %s4370_s15  ;;  %3967 = vmatprep.mubr.msk.bf16.mxu0 %vm2020_vm1, %v1989_v62  ;;  %v1961_v16 = vadd.f32 %v1929_v18, %v4751_v22  ;;  %v1681_v62 = vld [vmem:[%s4897_s29 + $0x60] sm:$0xff]  ;;  %v1682_v18 = vld [vmem:[%s4897_s29 + $0x68] sm:$0xff] }
 0x3f6   : > { %v1840_v6 = vpop.permute.xlu1 %1839  ;;  %3968 = vmatmul.mubr.msk.bf16.vlgmr.msra.gmra.mxu0 %vm2020_vm1, %v1990_v0  ;;  %v1842_v9 = vpop.permute.xlu0 %1841 }
 0x3f7   : > { %v1930_v10 = vmul.f32 %v1840_v6, %v1674_v2  ;;  %v1931_v13 = vmul.f32 %v1842_v9, %v1675_v5  ;;  %v1683_v6 = vld [vmem:[%s4897_s29 + $0x70] sm:$0xff] }
 0x3f9   : > { %v1962_v31 = vadd.f32 %v1930_v10, %v4759_v28  ;;  %v1963_v21 = vadd.f32 %v1931_v13, %v4748_v20 }
 0x3fa   : > { %v1844_v23 = vpop.permute.xlu1 %1843  ;;  %v1846_v27 = vpop.permute.xlu0 %1845 }
 0x3fb   : > { %v1991_v29 = vpack.c.bf16 %v1962_v31, %v1961_v16  ;;  %v1932_v32 = vmul.f32 %v1844_v23, %v1676_v14  ;;  %3162 = vrot.lane.b32.xlu0 %v1963_v21, %s4370_s15  ;;  %v1933_v40 = vmul.f32 %v1846_v27, %v1677_v41  ;;  %v4223_v41 = vld [vmem:[%s5465_s7 + $0x18] sm:$0xff]  }
 0x3fc   : > { %3999 = vmatprep.subr.bf16.mxu1 %v4223_v41 }
 0x3fd   : > { %v1964_v38 = vadd.f32 %v1932_v32, %v4756_v26  ;;  %3971 = vmatprep.mubr.msk.bf16.mxu0 %vm2020_vm1, %v1991_v29  ;;  %v1965_v55 = vadd.f32 %v1933_v40, %v4767_v37  ;;  %4000 = vmatpush3.bf16.msra.mxu1 %v4223_v41 }
 0x3fe   : > { %v1848_v43 = vpop.permute.xlu1 %1847  ;;  %v1850_v46 = vpop.permute.xlu0 %1849 }
 0x3ff   : > { %v1992_v47 = vpack.c.bf16 %v1964_v38, %v1963_v21  ;;  %v1934_v49 = vmul.f32 %v1848_v43, %v1678_v33  ;;  %v1935_v50 = vmul.f32 %v1850_v46, %v1679_v36  ;;  %3164 = vrot.lane.b32.xlu1 %v1964_v38, %s4370_s15  ;;  %3158 = vrot.lane.b32.xlu0 %v1961_v16, %s4370_s15  ;;  %v1685_v36 = vld [vmem:[%s4897_s29 + $0x80] sm:$0xff]  ;;  %v1686_v46 = vld [vmem:[%s4897_s29 + $0x88] sm:$0xff] }
 0x401   : > { %v1966_v56 = vadd.f32 %v1934_v49, %v4776_v48  ;;  %v1967_v60 = vadd.f32 %v1935_v50, %v4764_v34  ;;  %3972 = vmatmul.mubr.msk.bf16.gmra.mxu0 %vm2020_vm1, %v1992_v47  ;;  %v1687_v47 = vld [vmem:[%s4897_s29 + $0x90] sm:$0xff] }
 0x402   : > { %v1852_v61 = vpop.permute.xlu1 %1851  ;;  %v1854_v0 = vpop.permute.xlu0 %1853 }
 0x403   : > { %v1993_v2 = vpack.c.bf16 %v1966_v56, %v1965_v55  ;;  %v1936_v5 = vmul.f32 %v1852_v61, %v1680_v53  ;;  %3160 = vrot.lane.b32.xlu1 %v1962_v31, %s4370_s15  ;;  %3170 = vrot.lane.b32.xlu0 %v1967_v60, %s4370_s15  ;;  %v1937_v10 = vmul.f32 %v1854_v0, %v1681_v62  ;;  %v1684_v31 = vld [vmem:[%s4897_s29 + $0x78] sm:$0xff] }
 0x405   : > { %v1968_v9 = vadd.f32 %v1936_v5, %v4772_v44  ;;  %3975 = vmatprep.mubr.msk.bf16.mxu0 %vm2020_vm1, %v1993_v2  ;;  %v1969_v27 = vadd.f32 %v1937_v10, %v4786_v58 }
 0x406   : > { %v1856_v13 = vpop.permute.xlu1 %1855  ;;  %v1858_v14 = vpop.permute.xlu0 %1857 }
 0x407   : > { %v1994_v16 = vpack.c.bf16 %v1968_v9, %v1967_v60  ;;  %v1938_v21 = vmul.f32 %v1856_v13, %v1682_v18  ;;  %v1939_v23 = vmul.f32 %v1858_v14, %v1683_v6  ;;  %3172 = vrot.lane.b32.xlu1 %v1968_v9, %s4370_s15  ;;  %3166 = vrot.lane.b32.xlu0 %v1965_v55, %s4370_s15  ;;  %v1689_v6 = vld [vmem:[%s4897_s29 + $0xa0] sm:$0xff]  ;;  %v1690_v14 = vld [vmem:[%s4897_s29 + $0xa8] sm:$0xff] }
 0x409   : > { %v1970_v29 = vadd.f32 %v1938_v21, %v4795_v3  ;;  %v1971_v32 = vadd.f32 %v1939_v23, %v4782_v54  ;;  %3976 = vmatmul.mubr.msk.bf16.gmra.mxu0 %vm2020_vm1, %v1994_v16  ;;  %v1691_v16 = vld [vmem:[%s4897_s29 + $0xb0] sm:$0xff] }
 0x40a   : > { %v1860_v33 = vpop.permute.xlu1 %1859  ;;  %v1862_v38 = vpop.permute.xlu0 %1861 }
 0x40b   : > { %v1995_v40 = vpack.c.bf16 %v1970_v29, %v1969_v27  ;;  %v1940_v43 = vmul.f32 %v1860_v33, %v1684_v31  ;;  %3168 = vrot.lane.b32.xlu1 %v1966_v56, %s4370_s15  ;;  %3178 = vrot.lane.b32.xlu0 %v1971_v32, %s4370_s15  ;;  %v1941_v50 = vmul.f32 %v1862_v38, %v1685_v36  ;;  %v1688_v56 = vld [vmem:[%s4897_s29 + $0x98] sm:$0xff]  ;;  %v4224_v36 = vld [vmem:[%s5465_s7 + $0x10] sm:$0xff]  }
 0x40c   : > { %4001 = vmatprep.subr.bf16.mxu1 %v4224_v36 }
 0x40d   : > { %v1972_v49 = vadd.f32 %v1940_v43, %v4792_v63  ;;  %3979 = vmatprep.mubr.msk.bf16.mxu0 %vm2020_vm1, %v1995_v40  ;;  %v1973_v0 = vadd.f32 %v1941_v50, %v4804_v17  ;;  %4002 = vmatpush3.bf16.msra.mxu1 %v4224_v36 }
 0x40e   : > { %v1864_v53 = vpop.permute.xlu1 %1863  ;;  %v1866_v55 = vpop.permute.xlu0 %1865 }
 0x40f   : > { %v1996_v60 = vpack.c.bf16 %v1972_v49, %v1971_v32  ;;  %v1942_v61 = vmul.f32 %v1864_v53, %v1686_v46  ;;  %v1943_v62 = vmul.f32 %v1866_v55, %v1687_v47  ;;  %3180 = vrot.lane.b32.xlu1 %v1972_v49, %s4370_s15  ;;  %3174 = vrot.lane.b32.xlu0 %v1969_v27, %s4370_s15  ;;  %v1693_v47 = vld [vmem:[%s4897_s29 + $0xc0] sm:$0xff]  ;;  %v1694_v55 = vld [vmem:[%s4897_s29 + $0xc8] sm:$0xff] }
 0x411   : > { %v1974_v2 = vadd.f32 %v1942_v61, %v4814_v30  ;;  %v1975_v5 = vadd.f32 %v1943_v62, %v4801_v12  ;;  %3980 = vmatmul.mubr.msk.bf16.gmra.mxu0 %vm2020_vm1, %v1996_v60  ;;  %v1695_v60 = vld [vmem:[%s4897_s29 + $0xd0] sm:$0xff] }
 0x412   : > { %v1868_v18 = vpop.permute.xlu1 %1867  ;;  %v1870_v9 = vpop.permute.xlu0 %1869 }
 0x413   : > { %v1997_v10 = vpack.c.bf16 %v1974_v2, %v1973_v0  ;;  %v1944_v13 = vmul.f32 %v1868_v18, %v1688_v56  ;;  %3176 = vrot.lane.b32.xlu1 %v1970_v29, %s4370_s15  ;;  %3186 = vrot.lane.b32.xlu0 %v1975_v5, %s4370_s15  ;;  %v1945_v23 = vmul.f32 %v1870_v9, %v1689_v6  ;;  %v1692_v29 = vld [vmem:[%s4897_s29 + $0xb8] sm:$0xff] }
 0x415   : > { %v1976_v21 = vadd.f32 %v1944_v13, %v4811_v25  ;;  %3983 = vmatprep.mubr.msk.bf16.mxu0 %vm2020_vm1, %v1997_v10  ;;  %v1977_v38 = vadd.f32 %v1945_v23, %v4824_v45 }
 0x416   : > { %v1872_v31 = vpop.permute.xlu1 %1871  ;;  %v1874_v41 = vpop.permute.xlu0 %1873 }
 0x417   : > { %v1998_v27 = vpack.c.bf16 %v1976_v21, %v1975_v5  ;;  %v1946_v32 = vmul.f32 %v1872_v31, %v1690_v14  ;;  %v1947_v33 = vmul.f32 %v1874_v41, %v1691_v16  ;;  %3188 = vrot.lane.b32.xlu1 %v1976_v21, %s4370_s15  ;;  %3182 = vrot.lane.b32.xlu0 %v1973_v0, %s4370_s15  ;;  %v1697_v16 = vld [vmem:[%s4897_s29 + $0xe0] sm:$0xff]  ;;  %v1698_v41 = vld [vmem:[%s4897_s29 + $0xe8] sm:$0xff] }
 0x419   : > { %v1978_v40 = vadd.f32 %v1946_v32, %v4834_v57  ;;  %v1979_v43 = vadd.f32 %v1947_v33, %v4821_v39  ;;  %3984 = vmatmul.mubr.msk.bf16.gmra.mxu0 %vm2020_vm1, %v1998_v27 }
 0x41a   : > { %v1876_v46 = vpop.permute.xlu1 %1875  ;;  %v1878_v49 = vpop.permute.xlu0 %1877 }
 0x41b   : > { %v1999_v50 = vpack.c.bf16 %v1978_v40, %v1977_v38  ;;  %v1948_v53 = vmul.f32 %v1876_v46, %v1692_v29  ;;  %3184 = vrot.lane.b32.xlu1 %v1974_v2, %s4370_s15  ;;  %3194 = vrot.lane.b32.xlu0 %v1979_v43, %s4370_s15  ;;  %v1949_v62 = vmul.f32 %v1878_v49, %v1693_v47  ;;  %v1696_v2 = vld [vmem:[%s4897_s29 + $0xd8] sm:$0xff]  ;;  %v1699_v29 = vld [vmem:[%s4897_s29 + $0xf0] sm:$0xff] }
 0x41c   : > { %v1700_v46 = vld [vmem:[%s4897_s29 + $0xf8] sm:$0xff]  ;;  %s4311_s29 = sshll.u32 %s4371_s28, 4  ;;  %s4312_s29 = int_to_ptr.vmem [resolvable:$false] %s4311_s29 }
 0x41d   : > { %v1980_v61 = vadd.f32 %v1948_v53, %v4831_v52  ;;  %3987 = vmatprep.mubr.msk.bf16.mxu0 %vm2020_vm1, %v1999_v50  ;;  %v1981_v9 = vadd.f32 %v1949_v62, %v4844_v8  ;;  %s4313_s16 = scalar_lea.vmem %s4312_s29, 8192  ;;  %p4314_p0 = scmp.lt.s32.totalorder %s5411_s20, %s4312_s29 }
 0x41e   : > { %v1880_v56 = vpop.permute.xlu1 %1879  ;;  %v1882_v0 = vpop.permute.xlu0 %1881  ;;  %p4315_p1 = scmp.lt.s32.totalorder %s4313_s16, %s4307_s30 }
 0x41f   : > { %v2000_v5 = vpack.c.bf16 %v1980_v61, %v1979_v43  ;;  %v1950_v18 = vmul.f32 %v1880_v56, %v1694_v55  ;;  %v1951_v6 = vmul.f32 %v1882_v0, %v1695_v60  ;;  %3196 = vrot.lane.b32.xlu1 %v1980_v61, %s4370_s15  ;;  %3190 = vrot.lane.b32.xlu0 %v1977_v38, %s4370_s15  ;;  %v4226_v0 = vld [vmem:[%s5465_s7] sm:$0xff]  }
 0x420   : > { %p4316_p2 = por %p4315_p1, %p4314_p0 }
 0x421   : > { %v1982_v10 = vadd.f32 %v1950_v18, %v4854_v24  ;;  %v1983_v13 = vadd.f32 %v1951_v6, %v4841_v1  ;;  %3988 = vmatmul.mubr.msk.bf16.gmra.mxu0 %vm2020_vm1, %v2000_v5 }
 0x422   : > { %v1884_v14 = vpop.permute.xlu1 %1883  ;;  %v1886_v21 = vpop.permute.xlu0 %1885  ;;  %p4317_p3 = pnand %p4316_p2, %p4310_p13 }
 0x423   : > { %v2001_v23 = vpack.c.bf16 %v1982_v10, %v1981_v9  ;;  %v1952_v31 = vmul.f32 %v1884_v14, %v1696_v2  ;;  %3192 = vrot.lane.b32.xlu1 %v1978_v40, %s4370_s15  ;;  %3202 = vrot.lane.b32.xlu0 %v1983_v13, %s4370_s15  ;;  %v1953_v32 = vmul.f32 %v1886_v21, %v1697_v16  ;;  %v4225_v40 = vld [vmem:[%s5465_s7 + $0x8] sm:$0xff]  }
 0x424   : > { %4003 = vmatprep.subr.bf16.mxu1 %v4225_v40 }
 0x425   : > { %v1984_v27 = vadd.f32 %v1952_v31, %v4851_v19  ;;  %3991 = vmatprep.mubr.msk.bf16.mxu0 %vm2020_vm1, %v2001_v23  ;;  %v1985_v47 = vadd.f32 %v1953_v32, %v4864_v42  ;;  %4004 = vmatpush3.bf16.msra.mxu1 %v4225_v40 }
 0x426   : > { %v1888_v33 = vpop.permute.xlu1 %1887  ;;  %v1890_v36 = vpop.permute.xlu0 %1889  ;;  %4005 = vmatprep.subr.bf16.mxu1 %v4226_v0 }
 0x427   : > { %v2002_v38 = vpack.c.bf16 %v1984_v27, %v1983_v13  ;;  %v1954_v43 = vmul.f32 %v1888_v33, %v1698_v41  ;;  %3204 = vrot.lane.b32.xlu1 %v1984_v27, %s4370_s15  ;;  %3198 = vrot.lane.b32.xlu0 %v1981_v9, %s4370_s15  ;;  %v1955_v50 = vmul.f32 %v1890_v36, %v1699_v29 }
 0x429   : > { %v1986_v49 = vadd.f32 %v1954_v43, %v4874_v59  ;;  %3992 = vmatmul.mubr.msk.bf16.gmra.mxu0 %vm2020_vm1, %v2002_v38  ;;  %v1987_v61 = vadd.f32 %v1955_v50, %v4861_v35  ;;  %4006 = vmatpush3.bf16.msra.mxu1 %v4226_v0 }
 0x42a   : > { %v1892_v53 = vpop.permute.xlu1 %1891 }
 0x42b   : > { %v2003_v55 = vpack.c.bf16 %v1986_v49, %v1985_v47  ;;  %v1956_v60 = vmul.f32 %v1892_v53, %v1700_v46  ;;  %3200 = vrot.lane.b32.xlu1 %v1982_v10, %s4370_s15  ;;  %3206 = vrot.lane.b32.xlu0 %v1985_v47, %s4370_s15 }
 0x42d   : > { %v1988_v62 = vadd.f32 %v1956_v60, %v4871_v51  ;;  %3995 = vmatprep.mubr.msk.bf16.mxu0 %vm2020_vm1, %v2003_v55 }
 0x42f   : > { %v2004_v56 = vpack.c.bf16 %v1988_v62, %v1987_v61  ;;  %3208 = vrot.lane.b32.xlu1 %v1986_v49, %s4370_s15  ;;  %3210 = vrot.lane.b32.xlu0 %v1987_v61, %s4370_s15 }
 0x431   : > { %3996 = vmatmul.mubr.msk.bf16.gmra.mxu0 %vm2020_vm1, %v2004_v56 }
 0x433   : > { %3212 = vrot.lane.b32.xlu1 %v1988_v62, %s4370_s15  ;;  %v4228_v62 = vld [vmem:[%s5466_s8 + $0x30] sm:$0xff]  }
 0x45f   : > { %v3155_v5 = vpop.permute.xlu0 %3154 }
 0x460   : > { %v3249_v18 = vsel %vm3246_vm2, %v4732_v4, %v3155_v5 }
 0x461   : > { %v3282_v6 = vsel %vm3279_vm3, %v3249_v18, 0.0 }
 0x462   : > { %3314 = vst [vmem:[%s5028_s0 + $0x10] sm:$0xff] %v3282_v6  ;;  %v4229_v6 = vld [vmem:[%s5466_s8 + $0x28] sm:$0xff]  }
 0x463   : > { %v3157_v2 = vpop.permute.xlu1 %3156  ;;  %v3151_v9 = vpop.permute.xlu0 %3150 }
 0x464   : > { %v3250_v10 = vsel %vm3246_vm2, %v4740_v11, %v3157_v2  ;;  %v3247_v13 = vsel %vm3246_vm2, %v4736_v7, %v3151_v9 }
 0x465   : > { %v3283_v14 = vsel %vm3279_vm3, %v3250_v10, 0.0  ;;  %v3280_v16 = vsel %vm3279_vm3, %v3247_v13, 0.0 }
 0x466   : > { %3315 = vst [vmem:[%s5028_s0 + $0x18] sm:$0xff] %v3283_v14  ;;  %3312 = vst [vmem:[%s5028_s0] sm:$0xff] %v3280_v16  ;;  %v4230_v14 = vld [vmem:[%s5466_s8 + $0x20] sm:$0xff]  }
 0x467   : > { %v3153_v4 = vpop.permute.xlu1 %3152 }
 0x468   : > { %v3248_v21 = vsel %vm3246_vm2, %v4744_v15, %v3153_v4 }
 0x469   : > { %v3281_v23 = vsel %vm3279_vm3, %v3248_v21, 0.0 }
 0x46a   : > { %3313 = vst [vmem:[%s5028_s0 + $0x8] sm:$0xff] %v3281_v23 }
 0x46d   : > { %v3163_v31 = vpop.permute.xlu0 %3162 }
 0x46e   : > { %v3253_v11 = vsel %vm3246_vm2, %v4748_v20, %v3163_v31  ;;  %v4231_v31 = vld [vmem:[%s5466_s8 + $0x18] sm:$0xff]  }
 0x46f   : > { %v3286_v7 = vsel %vm3279_vm3, %v3253_v11, 0.0 }
 0x470   : > { %3318 = vst [vmem:[%s5028_s0 + $0x30] sm:$0xff] %v3286_v7 }
 0x471   : > { %v3165_v41 = vpop.permute.xlu1 %3164  ;;  %v3159_v27 = vpop.permute.xlu0 %3158 }
 0x472   : > { %v3254_v32 = vsel %vm3246_vm2, %v4756_v26, %v3165_v41  ;;  %v3251_v15 = vsel %vm3246_vm2, %v4751_v22, %v3159_v27 }
 0x473   : > { %v3287_v33 = vsel %vm3279_vm3, %v3254_v32, 0.0  ;;  %v3284_v29 = vsel %vm3279_vm3, %v3251_v15, 0.0  ;;  %v4232_v32 = vld [vmem:[%s5466_s8 + $0x10] sm:$0xff]  }
 0x474   : > { %3319 = vst [vmem:[%s5028_s0 + $0x38] sm:$0xff] %v3287_v33  ;;  %3316 = vst [vmem:[%s5028_s0 + $0x20] sm:$0xff] %v3284_v29 }
 0x475   : > { %v3161_v20 = vpop.permute.xlu1 %3160  ;;  %v3171_v36 = vpop.permute.xlu0 %3170 }
 0x476   : > { %v3252_v38 = vsel %vm3246_vm2, %v4759_v28, %v3161_v20  ;;  %v3257_v43 = vsel %vm3246_vm2, %v4764_v34, %v3171_v36 }
 0x477   : > { %v3285_v26 = vsel %vm3279_vm3, %v3252_v38, 0.0  ;;  %v3290_v22 = vsel %vm3279_vm3, %v3257_v43, 0.0 }
 0x478   : > { %3317 = vst [vmem:[%s5028_s0 + $0x28] sm:$0xff] %v3285_v26  ;;  %3322 = vst [vmem:[%s5028_s0 + $0x50] sm:$0xff] %v3290_v22 }
 0x479   : > { %v3173_v46 = vpop.permute.xlu1 %3172  ;;  %v3167_v40 = vpop.permute.xlu0 %3166 }
 0x47a   : > { %v3258_v47 = vsel %vm3246_vm2, %v4772_v44, %v3173_v46  ;;  %v3255_v49 = vsel %vm3246_vm2, %v4767_v37, %v3167_v40  ;;  %v4227_v37 = vld [vmem:[%s5466_s8 + $0x38] sm:$0xff]  }
 0x47b   : > { %v3291_v28 = vsel %vm3279_vm3, %v3258_v47, 0.0  ;;  %v3288_v34 = vsel %vm3279_vm3, %v3255_v49, 0.0  ;;  %4039 = vmatprep.subr.bf16.mxu0 %v4227_v37 }
 0x47c   : > { %3323 = vst [vmem:[%s5028_s0 + $0x58] sm:$0xff] %v3291_v28  ;;  %3320 = vst [vmem:[%s5028_s0 + $0x40] sm:$0xff] %v3288_v34  ;;  %4040 = vmatpush3.bf16.msra.mxu0 %v4227_v37 }
 0x47d   : > { %v3169_v50 = vpop.permute.xlu1 %3168  ;;  %v3179_v53 = vpop.permute.xlu0 %3178  ;;  %4041 = vmatprep.subr.bf16.mxu0 %v4228_v62 }
 0x47e   : > { %v3256_v55 = vsel %vm3246_vm2, %v4776_v48, %v3169_v50  ;;  %v3261_v60 = vsel %vm3246_vm2, %v4782_v54, %v3179_v53 }
 0x47f   : > { %v3289_v61 = vsel %vm3279_vm3, %v3256_v55, 0.0  ;;  %v3294_v44 = vsel %vm3279_vm3, %v3261_v60, 0.0 }
 0x480   : > { %3321 = vst [vmem:[%s5028_s0 + $0x48] sm:$0xff] %v3289_v61  ;;  %3326 = vst [vmem:[%s5028_s0 + $0x70] sm:$0xff] %v3294_v44  ;;  %4042 = vmatpush3.bf16.msra.mxu0 %v4228_v62 }
 0x481   : > { %v3181_v48 = vpop.permute.xlu1 %3180  ;;  %v3175_v56 = vpop.permute.xlu0 %3174  ;;  %4043 = vmatprep.subr.bf16.mxu0 %v4229_v6 }
 0x482   : > { %v3262_v54 = vsel %vm3246_vm2, %v4792_v63, %v3181_v48  ;;  %v3259_v0 = vsel %vm3246_vm2, %v4786_v58, %v3175_v56 }
 0x483   : > { %v3295_v5 = vsel %vm3279_vm3, %v3262_v54, 0.0  ;;  %v3292_v18 = vsel %vm3279_vm3, %v3259_v0, 0.0 }
 0x484   : > { %3327 = vst [vmem:[%s5028_s0 + $0x78] sm:$0xff] %v3295_v5  ;;  %3324 = vst [vmem:[%s5028_s0 + $0x60] sm:$0xff] %v3292_v18  ;;  %4044 = vmatpush3.bf16.msra.mxu0 %v4229_v6 }
 0x485   : > { %v3177_v2 = vpop.permute.xlu1 %3176  ;;  %v3187_v9 = vpop.permute.xlu0 %3186  ;;  %4045 = vmatprep.subr.bf16.mxu0 %v4230_v14 }
 0x486   : > { %v3260_v63 = vsel %vm3246_vm2, %v4795_v3, %v3177_v2  ;;  %v3265_v58 = vsel %vm3246_vm2, %v4801_v12, %v3187_v9 }
 0x487   : > { %v3293_v10 = vsel %vm3279_vm3, %v3260_v63, 0.0  ;;  %v3298_v13 = vsel %vm3279_vm3, %v3265_v58, 0.0 }
 0x488   : > { %3325 = vst [vmem:[%s5028_s0 + $0x68] sm:$0xff] %v3293_v10  ;;  %3330 = vst [vmem:[%s5028_s0 + $0x90] sm:$0xff] %v3298_v13  ;;  %4046 = vmatpush3.bf16.msra.mxu0 %v4230_v14 }
 0x489   : > { %v3189_v16 = vpop.permute.xlu1 %3188  ;;  %v3183_v4 = vpop.permute.xlu0 %3182  ;;  %4047 = vmatprep.subr.bf16.mxu0 %v4231_v31 }
 0x48a   : > { %v3266_v3 = vsel %vm3246_vm2, %v4811_v25, %v3189_v16  ;;  %v3263_v12 = vsel %vm3246_vm2, %v4804_v17, %v3183_v4 }
 0x48b   : > { %v3299_v21 = vsel %vm3279_vm3, %v3266_v3, 0.0  ;;  %v3296_v23 = vsel %vm3279_vm3, %v3263_v12, 0.0 }
 0x48c   : > { %3331 = vst [vmem:[%s5028_s0 + $0x98] sm:$0xff] %v3299_v21  ;;  %3328 = vst [vmem:[%s5028_s0 + $0x80] sm:$0xff] %v3296_v23  ;;  %4048 = vmatpush3.bf16.msra.mxu0 %v4231_v31 }
 0x48d   : > { %v3185_v11 = vpop.permute.xlu1 %3184  ;;  %v3195_v7 = vpop.permute.xlu0 %3194  ;;  %4049 = vmatprep.subr.bf16.mxu0 %v4232_v32 }
 0x48e   : > { %v3264_v25 = vsel %vm3246_vm2, %v4814_v30, %v3185_v11  ;;  %v3269_v17 = vsel %vm3246_vm2, %v4821_v39, %v3195_v7 }
 0x48f   : > { %v3297_v41 = vsel %vm3279_vm3, %v3264_v25, 0.0  ;;  %v3302_v27 = vsel %vm3279_vm3, %v3269_v17, 0.0 }
 0x490   : > { %3329 = vst [vmem:[%s5028_s0 + $0x88] sm:$0xff] %v3297_v41  ;;  %3334 = vst [vmem:[%s5028_s0 + $0xb0] sm:$0xff] %v3302_v27  ;;  %4050 = vmatpush3.bf16.msra.mxu0 %v4232_v32 }
 0x491   : > { %v3197_v15 = vpop.permute.xlu1 %3196  ;;  %v3191_v33 = vpop.permute.xlu0 %3190 }
 0x492   : > { %v3270_v30 = vsel %vm3246_vm2, %v4831_v52, %v3197_v15  ;;  %v3267_v39 = vsel %vm3246_vm2, %v4824_v45, %v3191_v33 }
 0x493   : > { %v3303_v29 = vsel %vm3279_vm3, %v3270_v30, 0.0  ;;  %v3300_v20 = vsel %vm3279_vm3, %v3267_v39, 0.0 }
 0x494   : > { %3335 = vst [vmem:[%s5028_s0 + $0xb8] sm:$0xff] %v3303_v29  ;;  %3332 = vst [vmem:[%s5028_s0 + $0xa0] sm:$0xff] %v3300_v20 }
 0x495   : > { %v3193_v36 = vpop.permute.xlu1 %3192  ;;  %v3203_v38 = vpop.permute.xlu0 %3202 }
 0x496   : > { %v3268_v43 = vsel %vm3246_vm2, %v4834_v57, %v3193_v36  ;;  %v3273_v52 = vsel %vm3246_vm2, %v4841_v1, %v3203_v38 }
 0x497   : > { %v3301_v45 = vsel %vm3279_vm3, %v3268_v43, 0.0  ;;  %v3306_v26 = vsel %vm3279_vm3, %v3273_v52, 0.0 }
 0x498   : > { %3333 = vst [vmem:[%s5028_s0 + $0xa8] sm:$0xff] %v3301_v45  ;;  %3338 = vst [vmem:[%s5028_s0 + $0xd0] sm:$0xff] %v3306_v26 }
 0x499   : > { %v3205_v22 = vpop.permute.xlu1 %3204  ;;  %v3199_v46 = vpop.permute.xlu0 %3198 }
 0x49a   : > { %v3274_v40 = vsel %vm3246_vm2, %v4851_v19, %v3205_v22  ;;  %v3271_v57 = vsel %vm3246_vm2, %v4844_v8, %v3199_v46 }
 0x49b   : > { %v3307_v47 = vsel %vm3279_vm3, %v3274_v40, 0.0  ;;  %v3304_v1 = vsel %vm3279_vm3, %v3271_v57, 0.0 }
 0x49c   : > { %3339 = vst [vmem:[%s5028_s0 + $0xd8] sm:$0xff] %v3307_v47  ;;  %3336 = vst [vmem:[%s5028_s0 + $0xc0] sm:$0xff] %v3304_v1 }
 0x49d   : > { %v3201_v49 = vpop.permute.xlu1 %3200  ;;  %v3207_v28 = vpop.permute.xlu0 %3206 }
 0x49e   : > { %v3272_v34 = vsel %vm3246_vm2, %v4854_v24, %v3201_v49  ;;  %v3275_v50 = vsel %vm3246_vm2, %v4864_v42, %v3207_v28 }
 0x49f   : > { %v3305_v19 = vsel %vm3279_vm3, %v3272_v34, 0.0  ;;  %v3308_v8 = vsel %vm3279_vm3, %v3275_v50, 0.0 }
 0x4a0   : > { %3337 = vst [vmem:[%s5028_s0 + $0xc8] sm:$0xff] %v3305_v19  ;;  %3340 = vst [vmem:[%s5028_s0 + $0xe0] sm:$0xff] %v3308_v8 }
 0x4a1   : > { %v3209_v53 = vpop.permute.xlu1 %3208  ;;  %v3211_v55 = vpop.permute.xlu0 %3210 }
 0x4a2   : > { %v3276_v60 = vsel %vm3246_vm2, %v4874_v59, %v3209_v53  ;;  %v3277_v61 = vsel %vm3246_vm2, %v4861_v35, %v3211_v55  ;;  %v5179_v59 = vld [vmem:[%s5468_s10 + $0x4] ss:$0 sm:$0xff] }
 0x4a3   : > { %v3309_v24 = vsel %vm3279_vm3, %v3276_v60, 0.0  ;;  %v3310_v44 = vsel %vm3279_vm3, %v3277_v61, 0.0 }
 0x4a4   : > { %3341 = vst [vmem:[%s5028_s0 + $0xe8] sm:$0xff] %v3309_v24  ;;  %3342 = vst [vmem:[%s5028_s0 + $0xf0] sm:$0xff] %v3310_v44 }
 0x4a5   : > { %v3213_v42 = vpop.permute.xlu1 %3212 }
 0x4a6   : > { %v3278_v37 = vsel %vm3246_vm2, %v4871_v51, %v3213_v42 }
 0x4a7   : > { %v3311_v62 = vsel %vm3279_vm3, %v3278_v37, 0.0 }
 0x4a8   : > { %3343 = vst [vmem:[%s5028_s0 + $0xf8] sm:$0xff] %v3311_v62  ;;  %s5409_s0 = scalar_lea.hbm %s5469_s11, %s3603_s17 }
 0x4b6   : > { %v3969_v48 = vpop.f32.mrf.mxu0 }
 0x4b7   : > { %v2112_v5 = vadd.f32 %v3969_v48, %v5179_v59 }
 0x4b8   : > { %v2103_v56 = vpop.f32.mrf.mxu0 }
 0x4b9   : > { %v2104_v54 = vadd.f32 %v5179_v59, %v2103_v56  ;;  %v2232_v63 = vmax.f32 %v2112_v5, 0.0 }
 0x4ba   : > { %v3970_v35 = vpop.f32.mrf.mxu0 }
 0x4bb   : > { %v2115_v0 = vadd.f32 %v3970_v35, %v5179_v59  ;;  %v2230_v2 = vmax.f32 %v2104_v54, 0.0 }
 0x4bc   : > { %v2106_v18 = vpop.f32.mrf.mxu0 }
 0x4bd   : > { %v2107_v51 = vadd.f32 %v5179_v59, %v2106_v18  ;;  %v2233_v6 = vmax.f32 %v2115_v0, 0.0 }
 0x4bf   : > { %v2231_v9 = vmax.f32 %v2107_v51, 0.0  ;;  %v2263_v13 = vpack.c.bf16 %v2233_v6, %v2232_v63 }
 0x4c1   : > { %v2262_v58 = vpack.c.bf16 %v2231_v9, %v2230_v2  ;;  %v3973_v10 = vpop.f32.mrf.mxu0 }
 0x4c2   : > { %v2128_v12 = vadd.f32 %v3973_v10, %v5179_v59 }
 0x4c3   : > { %v2119_v14 = vpop.f32.mrf.mxu0  ;;  %4007 = vmatprep.mubr.msk.bf16.mxu1 %vm1459_vm0, %v2262_v58 }
 0x4c4   : > { %4008 = vmatmul.mubr.msk.bf16.vlgmr.msra.gmra.mxu1 %vm1459_vm0, %v2263_v13  ;;  %v2120_v4 = vadd.f32 %v5179_v59, %v2119_v14  ;;  %v2236_v17 = vmax.f32 %v2128_v12, 0.0 }
 0x4c5   : > { %v3974_v16 = vpop.f32.mrf.mxu0 }
 0x4c6   : > { %v2131_v3 = vadd.f32 %v3974_v16, %v5179_v59  ;;  %v2234_v7 = vmax.f32 %v2120_v4, 0.0 }
 0x4c7   : > { %v2122_v21 = vpop.f32.mrf.mxu0 }
 0x4c8   : > { %v2123_v23 = vadd.f32 %v5179_v59, %v2122_v21  ;;  %v2237_v31 = vmax.f32 %v2131_v3, 0.0 }
 0x4c9   : > { %v3977_v11 = vpop.f32.mrf.mxu0 }
 0x4ca   : > { %v2235_v25 = vmax.f32 %v2123_v23, 0.0  ;;  %v2265_v32 = vpack.c.bf16 %v2237_v31, %v2236_v17  ;;  %v2144_v39 = vadd.f32 %v3977_v11, %v5179_v59 }
 0x4cb   : > { %v2135_v41 = vpop.f32.mrf.mxu0 }
 0x4cc   : > { %v2264_v27 = vpack.c.bf16 %v2235_v25, %v2234_v7  ;;  %v2136_v33 = vadd.f32 %v5179_v59, %v2135_v41  ;;  %v2240_v45 = vmax.f32 %v2144_v39, 0.0 }
 0x4cd   : > { %v3978_v15 = vpop.f32.mrf.mxu0 }
 0x4ce   : > { %v2147_v30 = vadd.f32 %v3978_v15, %v5179_v59  ;;  %4011 = vmatprep.mubr.msk.bf16.mxu1 %vm1459_vm0, %v2264_v27  ;;  %v2238_v43 = vmax.f32 %v2136_v33, 0.0 }
 0x4cf   : > { %v2138_v29 = vpop.f32.mrf.mxu0  ;;  %4012 = vmatmul.mubr.msk.bf16.gmra.mxu1 %vm1459_vm0, %v2265_v32 }
 0x4d0   : > { %v2139_v20 = vadd.f32 %v5179_v59, %v2138_v29  ;;  %v2241_v36 = vmax.f32 %v2147_v30, 0.0 }
 0x4d1   : > { %v3981_v38 = vpop.f32.mrf.mxu0 }
 0x4d2   : > { %v2239_v52 = vmax.f32 %v2139_v20, 0.0  ;;  %v2267_v46 = vpack.c.bf16 %v2241_v36, %v2240_v45  ;;  %v2160_v1 = vadd.f32 %v3981_v38, %v5179_v59 }
 0x4d3   : > { %v2151_v26 = vpop.f32.mrf.mxu0 }
 0x4d4   : > { %v2266_v22 = vpack.c.bf16 %v2239_v52, %v2238_v43  ;;  %v2152_v57 = vadd.f32 %v5179_v59, %v2151_v26  ;;  %v2244_v53 = vmax.f32 %v2160_v1, 0.0 }
 0x4d5   : > { %v3982_v40 = vpop.f32.mrf.mxu0 }
 0x4d6   : > { %v2163_v47 = vadd.f32 %v3982_v40, %v5179_v59  ;;  %4015 = vmatprep.mubr.msk.bf16.mxu1 %vm1459_vm0, %v2266_v22  ;;  %v2242_v19 = vmax.f32 %v2152_v57, 0.0 }
 0x4d7   : > { %v2154_v49 = vpop.f32.mrf.mxu0  ;;  %4016 = vmatmul.mubr.msk.bf16.gmra.mxu1 %vm1459_vm0, %v2267_v46 }
 0x4d8   : > { %v2155_v28 = vadd.f32 %v5179_v59, %v2154_v49  ;;  %v2245_v34 = vmax.f32 %v2163_v47, 0.0 }
 0x4d9   : > { %v3985_v50 = vpop.f32.mrf.mxu0 }
 0x4da   : > { %v2243_v8 = vmax.f32 %v2155_v28, 0.0  ;;  %v2269_v61 = vpack.c.bf16 %v2245_v34, %v2244_v53  ;;  %v2176_v37 = vadd.f32 %v3985_v50, %v5179_v59  ;;  %v4233_v28 = vld [vmem:[%s5466_s8 + $0x8] sm:$0xff]   ;;  %v4235_v34 = vld [vmem:[%s5467_s9 + $0x38] sm:$0xff]   ;;  %v4236_v50 = vld [vmem:[%s5467_s9 + $0x30] sm:$0xff]  }
 0x4db   : > { %v2167_v55 = vpop.f32.mrf.mxu0  ;;  %4051 = vmatprep.subr.bf16.mxu0 %v4233_v28  ;;  %4087 = vmatprep.subr.bf16.mxu1 %v4235_v34  ;;  %v4239_v53 = vld [vmem:[%s5467_s9 + $0x18] sm:$0xff]  }
 0x4dc   : > { %v2268_v60 = vpack.c.bf16 %v2243_v8, %v2242_v19  ;;  %v2168_v44 = vadd.f32 %v5179_v59, %v2167_v55  ;;  %v2248_v5 = vmax.f32 %v2176_v37, 0.0  ;;  %4052 = vmatpush3.bf16.msra.mxu0 %v4233_v28  ;;  %4088 = vmatpush3.bf16.msra.mxu1 %v4235_v34  ;;  %v4237_v19 = vld [vmem:[%s5467_s9 + $0x28] sm:$0xff]   ;;  %v4238_v8 = vld [vmem:[%s5467_s9 + $0x20] sm:$0xff]   ;;  %v4240_v55 = vld [vmem:[%s5467_s9 + $0x10] sm:$0xff]  }
 0x4dd   : > { %v3986_v24 = vpop.f32.mrf.mxu0  ;;  %4089 = vmatprep.subr.bf16.mxu1 %v4236_v50 }
 0x4de   : > { %v2179_v42 = vadd.f32 %v3986_v24, %v5179_v59  ;;  %4019 = vmatprep.mubr.msk.bf16.mxu1 %vm1459_vm0, %v2268_v60  ;;  %v2246_v54 = vmax.f32 %v2168_v44, 0.0  ;;  %v5256_v24 = vld [vmem:[%s5468_s10 + $0x5] ss:$0 sm:$0xff] }
 0x4df   : > { %v2170_v62 = vpop.f32.mrf.mxu0  ;;  %4020 = vmatmul.mubr.msk.bf16.gmra.mxu1 %vm1459_vm0, %v2269_v61 }
 0x4e0   : > { %v2171_v48 = vadd.f32 %v5179_v59, %v2170_v62  ;;  %v2249_v56 = vmax.f32 %v2179_v42, 0.0  ;;  %4090 = vmatpush3.bf16.msra.mxu1 %v4236_v50 }
 0x4e1   : > { %v3989_v35 = vpop.f32.mrf.mxu0  ;;  %4091 = vmatprep.subr.bf16.mxu1 %v4237_v19 }
 0x4e2   : > { %v2247_v0 = vmax.f32 %v2171_v48, 0.0  ;;  %v2271_v6 = vpack.c.bf16 %v2249_v56, %v2248_v5  ;;  %v2192_v58 = vadd.f32 %v3989_v35, %v5179_v59 }
 0x4e3   : > { %v2183_v18 = vpop.f32.mrf.mxu0 }
 0x4e4   : > { %v2270_v51 = vpack.c.bf16 %v2247_v0, %v2246_v54  ;;  %v2184_v9 = vadd.f32 %v5179_v59, %v2183_v18  ;;  %v2252_v12 = vmax.f32 %v2192_v58, 0.0  ;;  %4092 = vmatpush3.bf16.msra.mxu1 %v4237_v19 }
 0x4e5   : > { %v3990_v2 = vpop.f32.mrf.mxu0  ;;  %4093 = vmatprep.subr.bf16.mxu1 %v4238_v8 }
 0x4e6   : > { %v2195_v63 = vadd.f32 %v3990_v2, %v5179_v59  ;;  %4023 = vmatprep.mubr.msk.bf16.mxu1 %vm1459_vm0, %v2270_v51  ;;  %v2250_v4 = vmax.f32 %v2184_v9, 0.0 }
 0x4e7   : > { %v2186_v10 = vpop.f32.mrf.mxu0  ;;  %4024 = vmatmul.mubr.msk.bf16.gmra.mxu1 %vm1459_vm0, %v2271_v6 }
 0x4e8   : > { %v2187_v13 = vadd.f32 %v5179_v59, %v2186_v10  ;;  %v2253_v14 = vmax.f32 %v2195_v63, 0.0  ;;  %4094 = vmatpush3.bf16.msra.mxu1 %v4238_v8 }
 0x4e9   : > { %v3993_v16 = vpop.f32.mrf.mxu0  ;;  %4095 = vmatprep.subr.bf16.mxu1 %v4239_v53 }
 0x4ea   : > { %v2251_v3 = vmax.f32 %v2187_v13, 0.0  ;;  %v2273_v31 = vpack.c.bf16 %v2253_v14, %v2252_v12  ;;  %v2208_v17 = vadd.f32 %v3993_v16, %v5179_v59 }
 0x4eb   : > { %v2199_v21 = vpop.f32.mrf.mxu0 }
 0x4ec   : > { %v2272_v23 = vpack.c.bf16 %v2251_v3, %v2250_v4  ;;  %v2200_v7 = vadd.f32 %v5179_v59, %v2199_v21  ;;  %v2256_v39 = vmax.f32 %v2208_v17, 0.0  ;;  %4096 = vmatpush3.bf16.msra.mxu1 %v4239_v53 }
 0x4ed   : > { %v3994_v11 = vpop.f32.mrf.mxu0  ;;  %4097 = vmatprep.subr.bf16.mxu1 %v4240_v55 }
 0x4ee   : > { %v2211_v25 = vadd.f32 %v3994_v11, %v5179_v59  ;;  %4027 = vmatprep.mubr.msk.bf16.mxu1 %vm1459_vm0, %v2272_v23  ;;  %v2254_v33 = vmax.f32 %v2200_v7, 0.0 }
 0x4ef   : > { %v2202_v41 = vpop.f32.mrf.mxu0  ;;  %4028 = vmatmul.mubr.msk.bf16.gmra.mxu1 %vm1459_vm0, %v2273_v31 }
 0x4f0   : > { %v2203_v27 = vadd.f32 %v5179_v59, %v2202_v41  ;;  %v2257_v32 = vmax.f32 %v2211_v25, 0.0  ;;  %4098 = vmatpush3.bf16.msra.mxu1 %v4240_v55 }
 0x4f1   : > { %v3997_v15 = vpop.f32.mrf.mxu0 }
 0x4f2   : > { %v2255_v30 = vmax.f32 %v2203_v27, 0.0  ;;  %v2275_v36 = vpack.c.bf16 %v2257_v32, %v2256_v39  ;;  %v2224_v45 = vadd.f32 %v3997_v15, %v5179_v59 }
 0x4f3   : > { %v2215_v29 = vpop.f32.mrf.mxu0 }
 0x4f4   : > { %v2274_v20 = vpack.c.bf16 %v2255_v30, %v2254_v33  ;;  %v2216_v43 = vadd.f32 %v5179_v59, %v2215_v29  ;;  %v2260_v47 = vmax.f32 %v2224_v45, 0.0 }
 0x4f5   : > { %v3998_v38 = vpop.f32.mrf.mxu0 }
 0x4f6   : > { %v2227_v52 = vadd.f32 %v3998_v38, %v5179_v59  ;;  %4031 = vmatprep.mubr.msk.bf16.mxu1 %vm1459_vm0, %v2274_v20  ;;  %v2258_v40 = vmax.f32 %v2216_v43, 0.0 }
 0x4f7   : > { %v2218_v26 = vpop.f32.mrf.mxu0  ;;  %4032 = vmatmul.mubr.msk.bf16.gmra.mxu1 %vm1459_vm0, %v2275_v36 }
 0x4f8   : > { %v2219_v22 = vadd.f32 %v5179_v59, %v2218_v26  ;;  %v2261_v46 = vmax.f32 %v2227_v52, 0.0  ;;  %v4234_v59 = vld [vmem:[%s5466_s8] sm:$0xff]  }
 0x4f9   : > { %4053 = vmatprep.subr.bf16.mxu0 %v4234_v59 }
 0x4fa   : > { %v2259_v57 = vmax.f32 %v2219_v22, 0.0  ;;  %v2277_v49 = vpack.c.bf16 %v2261_v46, %v2260_v47  ;;  %4054 = vmatpush3.bf16.msra.mxu0 %v4234_v59 }
 0x4fc   : > { %v2276_v1 = vpack.c.bf16 %v2259_v57, %v2258_v40 }
 0x4fe   : > { %4035 = vmatprep.mubr.msk.bf16.mxu1 %vm1459_vm0, %v2276_v1 }
 0x4ff   : > { %4036 = vmatmul.mubr.msk.bf16.gmra.mxu1 %vm1459_vm0, %v2277_v49 }
 0x584   : > { %v4009_v60 = vpop.f32.mrf.mxu1 }
 0x585   : > { %v2408_v62 = vadd.f32 %v4009_v60, %v5256_v24 }
 0x586   : > { %v2399_v61 = vpop.f32.mrf.mxu1 }
 0x587   : > { %v2400_v42 = vadd.f32 %v5256_v24, %v2399_v61  ;;  %v2528_v5 = vmax.f32 %v2408_v62, 0.0 }
 0x588   : > { %v4010_v44 = vpop.f32.mrf.mxu1 }
 0x589   : > { %v2411_v37 = vadd.f32 %v4010_v44, %v5256_v24  ;;  %v2526_v54 = vmax.f32 %v2400_v42, 0.0 }
 0x58a   : > { %v2402_v48 = vpop.f32.mrf.mxu1 }
 0x58b   : > { %v2403_v56 = vadd.f32 %v5256_v24, %v2402_v48  ;;  %v2529_v35 = vmax.f32 %v2411_v37, 0.0 }
 0x58d   : > { %v2527_v0 = vmax.f32 %v2403_v56, 0.0  ;;  %v2559_v6 = vpack.c.bf16 %v2529_v35, %v2528_v5 }
 0x58f   : > { %v2558_v18 = vpack.c.bf16 %v2527_v0, %v2526_v54  ;;  %v4013_v51 = vpop.f32.mrf.mxu1 }
 0x590   : > { %v2424_v10 = vadd.f32 %v4013_v51, %v5256_v24 }
 0x591   : > { %v2415_v2 = vpop.f32.mrf.mxu1  ;;  %4055 = vmatprep.mubr.bf16.mxu0 %v2558_v18 }
 0x592   : > { %4056 = vmatmul.mubr.bf16.vlgmr.msra.gmra.mxu0 %v2559_v6  ;;  %v2416_v63 = vadd.f32 %v5256_v24, %v2415_v2  ;;  %v2532_v21 = vmax.f32 %v2424_v10, 0.0 }
 0x593   : > { %v4014_v9 = vpop.f32.mrf.mxu1 }
 0x594   : > { %v2427_v58 = vadd.f32 %v4014_v9, %v5256_v24  ;;  %v2530_v3 = vmax.f32 %v2416_v63, 0.0 }
 0x595   : > { %v2418_v13 = vpop.f32.mrf.mxu1 }
 0x596   : > { %v2419_v14 = vadd.f32 %v5256_v24, %v2418_v13  ;;  %v2533_v16 = vmax.f32 %v2427_v58, 0.0 }
 0x597   : > { %v4017_v4 = vpop.f32.mrf.mxu1 }
 0x598   : > { %v2531_v12 = vmax.f32 %v2419_v14, 0.0  ;;  %v2561_v11 = vpack.c.bf16 %v2533_v16, %v2532_v21  ;;  %v2440_v41 = vadd.f32 %v4017_v4, %v5256_v24 }
 0x599   : > { %v2431_v23 = vpop.f32.mrf.mxu1 }
 0x59a   : > { %v2560_v31 = vpack.c.bf16 %v2531_v12, %v2530_v3  ;;  %v2432_v25 = vadd.f32 %v5256_v24, %v2431_v23  ;;  %v2536_v29 = vmax.f32 %v2440_v41, 0.0 }
 0x59b   : > { %v4018_v7 = vpop.f32.mrf.mxu1 }
 0x59c   : > { %v2443_v17 = vadd.f32 %v4018_v7, %v5256_v24  ;;  %4059 = vmatprep.mubr.bf16.mxu0 %v2560_v31  ;;  %v2534_v30 = vmax.f32 %v2432_v25, 0.0 }
 0x59d   : > { %v2434_v27 = vpop.f32.mrf.mxu1  ;;  %4060 = vmatmul.mubr.bf16.gmra.mxu0 %v2561_v11 }
 0x59e   : > { %v2435_v32 = vadd.f32 %v5256_v24, %v2434_v27  ;;  %v2537_v15 = vmax.f32 %v2443_v17, 0.0 }
 0x59f   : > { %v4021_v33 = vpop.f32.mrf.mxu1 }
 0x5a0   : > { %v2535_v39 = vmax.f32 %v2435_v32, 0.0  ;;  %v2563_v38 = vpack.c.bf16 %v2537_v15, %v2536_v29  ;;  %v2456_v26 = vadd.f32 %v4021_v33, %v5256_v24 }
 0x5a1   : > { %v2447_v20 = vpop.f32.mrf.mxu1 }
 0x5a2   : > { %v2562_v36 = vpack.c.bf16 %v2535_v39, %v2534_v30  ;;  %v2448_v52 = vadd.f32 %v5256_v24, %v2447_v20  ;;  %v2540_v49 = vmax.f32 %v2456_v26, 0.0 }
 0x5a3   : > { %v4022_v43 = vpop.f32.mrf.mxu1 }
 0x5a4   : > { %v2459_v45 = vadd.f32 %v4022_v43, %v5256_v24  ;;  %4063 = vmatprep.mubr.bf16.mxu0 %v2562_v36  ;;  %v2538_v47 = vmax.f32 %v2448_v52, 0.0 }
 0x5a5   : > { %v2450_v22 = vpop.f32.mrf.mxu1  ;;  %4064 = vmatmul.mubr.bf16.gmra.mxu0 %v2563_v38 }
 0x5a6   : > { %v2451_v46 = vadd.f32 %v5256_v24, %v2450_v22  ;;  %v2541_v40 = vmax.f32 %v2459_v45, 0.0 }
 0x5a7   : > { %v4025_v57 = vpop.f32.mrf.mxu1 }
 0x5a8   : > { %v2539_v1 = vmax.f32 %v2451_v46, 0.0  ;;  %v2565_v34 = vpack.c.bf16 %v2541_v40, %v2540_v49  ;;  %v2472_v53 = vadd.f32 %v4025_v57, %v5256_v24  ;;  %v4241_v46 = vld [vmem:[%s5467_s9 + $0x8] sm:$0xff]   ;;  %v4242_v40 = vld [vmem:[%s5467_s9] sm:$0xff]  }
 0x5a9   : > { %v2463_v28 = vpop.f32.mrf.mxu1  ;;  %4099 = vmatprep.subr.bf16.mxu1 %v4241_v46 }
 0x5aa   : > { %v2564_v59 = vpack.c.bf16 %v2539_v1, %v2538_v47  ;;  %v2464_v19 = vadd.f32 %v5256_v24, %v2463_v28  ;;  %v2544_v62 = vmax.f32 %v2472_v53, 0.0  ;;  %4100 = vmatpush3.bf16.msra.mxu1 %v4241_v46  ;;  %v5299_v47 = vld [vmem:[%s5468_s10 + $0x6] ss:$0 sm:$0xff] }
 0x5ab   : > { %v4026_v50 = vpop.f32.mrf.mxu1  ;;  %4101 = vmatprep.subr.bf16.mxu1 %v4242_v40 }
 0x5ac   : > { %v2475_v8 = vadd.f32 %v4026_v50, %v5256_v24  ;;  %4067 = vmatprep.mubr.bf16.mxu0 %v2564_v59  ;;  %v2542_v42 = vmax.f32 %v2464_v19, 0.0 }
 0x5ad   : > { %v2466_v55 = vpop.f32.mrf.mxu1  ;;  %4068 = vmatmul.mubr.bf16.gmra.mxu0 %v2565_v34 }
 0x5ae   : > { %v2467_v60 = vadd.f32 %v5256_v24, %v2466_v55  ;;  %v2545_v61 = vmax.f32 %v2475_v8, 0.0  ;;  %4102 = vmatpush3.bf16.msra.mxu1 %v4242_v40 }
 0x5af   : > { %v4029_v44 = vpop.f32.mrf.mxu1 }
 0x5b0   : > { %v2543_v37 = vmax.f32 %v2467_v60, 0.0  ;;  %v2567_v35 = vpack.c.bf16 %v2545_v61, %v2544_v62  ;;  %v2488_v18 = vadd.f32 %v4029_v44, %v5256_v24 }
 0x5b1   : > { %v2479_v48 = vpop.f32.mrf.mxu1 }
 0x5b2   : > { %v2566_v56 = vpack.c.bf16 %v2543_v37, %v2542_v42  ;;  %v2480_v0 = vadd.f32 %v5256_v24, %v2479_v48  ;;  %v2548_v10 = vmax.f32 %v2488_v18, 0.0 }
 0x5b3   : > { %v4030_v54 = vpop.f32.mrf.mxu1 }
 0x5b4   : > { %v2491_v5 = vadd.f32 %v4030_v54, %v5256_v24  ;;  %4071 = vmatprep.mubr.bf16.mxu0 %v2566_v56  ;;  %v2546_v63 = vmax.f32 %v2480_v0, 0.0 }
 0x5b5   : > { %v2482_v51 = vpop.f32.mrf.mxu1  ;;  %4072 = vmatmul.mubr.bf16.gmra.mxu0 %v2567_v35 }
 0x5b6   : > { %v2483_v6 = vadd.f32 %v5256_v24, %v2482_v51  ;;  %v2549_v2 = vmax.f32 %v2491_v5, 0.0 }
 0x5b7   : > { %v4033_v9 = vpop.f32.mrf.mxu1 }
 0x5b8   : > { %v2547_v58 = vmax.f32 %v2483_v6, 0.0  ;;  %v2569_v16 = vpack.c.bf16 %v2549_v2, %v2548_v10  ;;  %v2504_v21 = vadd.f32 %v4033_v9, %v5256_v24 }
 0x5b9   : > { %v2495_v13 = vpop.f32.mrf.mxu1 }
 0x5ba   : > { %v2568_v14 = vpack.c.bf16 %v2547_v58, %v2546_v63  ;;  %v2496_v3 = vadd.f32 %v5256_v24, %v2495_v13  ;;  %v2552_v41 = vmax.f32 %v2504_v21, 0.0 }
 0x5bb   : > { %v4034_v4 = vpop.f32.mrf.mxu1 }
 0x5bc   : > { %v2507_v12 = vadd.f32 %v4034_v4, %v5256_v24  ;;  %4075 = vmatprep.mubr.bf16.mxu0 %v2568_v14  ;;  %v2550_v25 = vmax.f32 %v2496_v3, 0.0 }
 0x5bd   : > { %v2498_v23 = vpop.f32.mrf.mxu1  ;;  %4076 = vmatmul.mubr.bf16.gmra.mxu0 %v2569_v16 }
 0x5be   : > { %v2499_v31 = vadd.f32 %v5256_v24, %v2498_v23  ;;  %v2553_v11 = vmax.f32 %v2507_v12, 0.0 }
 0x5bf   : > { %v4037_v7 = vpop.f32.mrf.mxu1 }
 0x5c0   : > { %v2551_v17 = vmax.f32 %v2499_v31, 0.0  ;;  %v2571_v15 = vpack.c.bf16 %v2553_v11, %v2552_v41  ;;  %v2520_v29 = vadd.f32 %v4037_v7, %v5256_v24 }
 0x5c1   : > { %v2511_v27 = vpop.f32.mrf.mxu1 }
 0x5c2   : > { %v2570_v32 = vpack.c.bf16 %v2551_v17, %v2550_v25  ;;  %v2512_v30 = vadd.f32 %v5256_v24, %v2511_v27  ;;  %v2556_v45 = vmax.f32 %v2520_v29, 0.0 }
 0x5c3   : > { %v4038_v33 = vpop.f32.mrf.mxu1 }
 0x5c4   : > { %v2523_v39 = vadd.f32 %v4038_v33, %v5256_v24  ;;  %4079 = vmatprep.mubr.bf16.mxu0 %v2570_v32  ;;  %v2554_v43 = vmax.f32 %v2512_v30, 0.0 }
 0x5c5   : > { %v2514_v20 = vpop.f32.mrf.mxu1  ;;  %4080 = vmatmul.mubr.bf16.gmra.mxu0 %v2571_v15 }
 0x5c6   : > { %v2515_v36 = vadd.f32 %v5256_v24, %v2514_v20  ;;  %v2557_v38 = vmax.f32 %v2523_v39, 0.0 }
 0x5c8   : > { %v2555_v52 = vmax.f32 %v2515_v36, 0.0  ;;  %v2573_v22 = vpack.c.bf16 %v2557_v38, %v2556_v45 }
 0x5ca   : > { %v2572_v26 = vpack.c.bf16 %v2555_v52, %v2554_v43 }
 0x5cc   : > { %4083 = vmatprep.mubr.bf16.mxu0 %v2572_v26 }
 0x5cd   : > { %4084 = vmatmul.mubr.bf16.gmra.mxu0 %v2573_v22 }
 0x652   : > { %v4057_v24 = vpop.f32.mrf.mxu0 }
 0x653   : > { %v2688_v59 = vadd.f32 %v4057_v24, %v5299_v47 }
 0x654   : > { %v2679_v57 = vpop.f32.mrf.mxu0 }
 0x655   : > { %v2680_v49 = vadd.f32 %v5299_v47, %v2679_v57  ;;  %v2808_v55 = vmax.f32 %v2688_v59, 0.0 }
 0x656   : > { %v4058_v1 = vpop.f32.mrf.mxu0 }
 0x657   : > { %v2691_v28 = vadd.f32 %v4058_v1, %v5299_v47  ;;  %v2806_v8 = vmax.f32 %v2680_v49, 0.0 }
 0x658   : > { %v2682_v34 = vpop.f32.mrf.mxu0 }
 0x659   : > { %v2683_v50 = vadd.f32 %v5299_v47, %v2682_v34  ;;  %v2809_v19 = vmax.f32 %v2691_v28, 0.0 }
 0x65b   : > { %v2807_v53 = vmax.f32 %v2683_v50, 0.0  ;;  %v2839_v44 = vpack.c.bf16 %v2809_v19, %v2808_v55 }
 0x65d   : > { %v2838_v60 = vpack.c.bf16 %v2807_v53, %v2806_v8  ;;  %v4061_v61 = vpop.f32.mrf.mxu0 }
 0x65e   : > { %v2704_v56 = vadd.f32 %v4061_v61, %v5299_v47 }
 0x65f   : > { %v2695_v42 = vpop.f32.mrf.mxu0  ;;  %4103 = vmatprep.mubr.bf16.mxu1 %v2838_v60 }
 0x660   : > { %4104 = vmatmul.mubr.bf16.vlgmr.msra.gmra.mxu1 %v2839_v44  ;;  %v2696_v62 = vadd.f32 %v5299_v47, %v2695_v42  ;;  %v2812_v6 = vmax.f32 %v2704_v56, 0.0 }
 0x661   : > { %v4062_v37 = vpop.f32.mrf.mxu0 }
 0x662   : > { %v2707_v48 = vadd.f32 %v4062_v37, %v5299_v47  ;;  %v2810_v18 = vmax.f32 %v2696_v62, 0.0 }
 0x663   : > { %v2698_v35 = vpop.f32.mrf.mxu0 }
 0x664   : > { %v2699_v54 = vadd.f32 %v5299_v47, %v2698_v35  ;;  %v2813_v0 = vmax.f32 %v2707_v48, 0.0 }
 0x665   : > { %v4065_v5 = vpop.f32.mrf.mxu0 }
 0x666   : > { %v2811_v51 = vmax.f32 %v2699_v54, 0.0  ;;  %v2841_v63 = vpack.c.bf16 %v2813_v0, %v2812_v6  ;;  %v2720_v14 = vadd.f32 %v4065_v5, %v5299_v47 }
 0x667   : > { %v2711_v2 = vpop.f32.mrf.mxu0 }
 0x668   : > { %v2840_v9 = vpack.c.bf16 %v2811_v51, %v2810_v18  ;;  %v2712_v10 = vadd.f32 %v5299_v47, %v2711_v2  ;;  %v2816_v31 = vmax.f32 %v2720_v14, 0.0 }
 0x669   : > { %v4066_v58 = vpop.f32.mrf.mxu0 }
 0x66a   : > { %v2723_v13 = vadd.f32 %v4066_v58, %v5299_v47  ;;  %4107 = vmatprep.mubr.bf16.mxu1 %v2840_v9  ;;  %v2814_v21 = vmax.f32 %v2712_v10, 0.0 }
 0x66b   : > { %v2714_v16 = vpop.f32.mrf.mxu0  ;;  %4108 = vmatmul.mubr.bf16.gmra.mxu1 %v2841_v63 }
 0x66c   : > { %v2715_v4 = vadd.f32 %v5299_v47, %v2714_v16  ;;  %v2817_v3 = vmax.f32 %v2723_v13, 0.0 }
 0x66d   : > { %v4069_v12 = vpop.f32.mrf.mxu0 }
 0x66e   : > { %v2815_v23 = vmax.f32 %v2715_v4, 0.0  ;;  %v2843_v25 = vpack.c.bf16 %v2817_v3, %v2816_v31  ;;  %v2736_v32 = vadd.f32 %v4069_v12, %v5299_v47 }
 0x66f   : > { %v2727_v11 = vpop.f32.mrf.mxu0 }
 0x670   : > { %v2842_v7 = vpack.c.bf16 %v2815_v23, %v2814_v21  ;;  %v2728_v41 = vadd.f32 %v5299_v47, %v2727_v11  ;;  %v2820_v36 = vmax.f32 %v2736_v32, 0.0 }
 0x671   : > { %v4070_v17 = vpop.f32.mrf.mxu0 }
 0x672   : > { %v2739_v27 = vadd.f32 %v4070_v17, %v5299_v47  ;;  %4111 = vmatprep.mubr.bf16.mxu1 %v2842_v7  ;;  %v2818_v29 = vmax.f32 %v2728_v41, 0.0 }
 0x673   : > { %v2730_v15 = vpop.f32.mrf.mxu0  ;;  %4112 = vmatmul.mubr.bf16.gmra.mxu1 %v2843_v25 }
 0x674   : > { %v2731_v33 = vadd.f32 %v5299_v47, %v2730_v15  ;;  %v2821_v30 = vmax.f32 %v2739_v27, 0.0 }
 0x675   : > { %v4073_v39 = vpop.f32.mrf.mxu0 }
 0x676   : > { %v2819_v20 = vmax.f32 %v2731_v33, 0.0  ;;  %v2845_v52 = vpack.c.bf16 %v2821_v30, %v2820_v36  ;;  %v2752_v46 = vadd.f32 %v4073_v39, %v5299_v47  ;;  %v5339_v33 = vld [vmem:[%s5468_s10 + $0x7] ss:$0 sm:$0xff] }
 0x677   : > { %v2743_v38 = vpop.f32.mrf.mxu0 }
 0x678   : > { %v2844_v43 = vpack.c.bf16 %v2819_v20, %v2818_v29  ;;  %v2744_v26 = vadd.f32 %v5299_v47, %v2743_v38  ;;  %v2824_v59 = vmax.f32 %v2752_v46, 0.0 }
 0x679   : > { %v4074_v45 = vpop.f32.mrf.mxu0 }
 0x67a   : > { %v2755_v22 = vadd.f32 %v4074_v45, %v5299_v47  ;;  %4115 = vmatprep.mubr.bf16.mxu1 %v2844_v43  ;;  %v2822_v49 = vmax.f32 %v2744_v26, 0.0 }
 0x67b   : > { %v2746_v40 = vpop.f32.mrf.mxu0  ;;  %4116 = vmatmul.mubr.bf16.gmra.mxu1 %v2845_v52 }
 0x67c   : > { %v2747_v24 = vadd.f32 %v5299_v47, %v2746_v40  ;;  %v2825_v57 = vmax.f32 %v2755_v22, 0.0 }
 0x67d   : > { %v4077_v1 = vpop.f32.mrf.mxu0 }
 0x67e   : > { %v2823_v28 = vmax.f32 %v2747_v24, 0.0  ;;  %v2847_v19 = vpack.c.bf16 %v2825_v57, %v2824_v59  ;;  %v2768_v60 = vadd.f32 %v4077_v1, %v5299_v47 }
 0x67f   : > { %v2759_v34 = vpop.f32.mrf.mxu0 }
 0x680   : > { %v2846_v50 = vpack.c.bf16 %v2823_v28, %v2822_v49  ;;  %v2760_v53 = vadd.f32 %v5299_v47, %v2759_v34  ;;  %v2828_v56 = vmax.f32 %v2768_v60, 0.0 }
 0x681   : > { %v4078_v8 = vpop.f32.mrf.mxu0 }
 0x682   : > { %v2771_v55 = vadd.f32 %v4078_v8, %v5299_v47  ;;  %4119 = vmatprep.mubr.bf16.mxu1 %v2846_v50  ;;  %v2826_v62 = vmax.f32 %v2760_v53, 0.0 }
 0x683   : > { %v2762_v61 = vpop.f32.mrf.mxu0  ;;  %4120 = vmatmul.mubr.bf16.gmra.mxu1 %v2847_v19 }
 0x684   : > { %v2763_v44 = vadd.f32 %v5299_v47, %v2762_v61  ;;  %v2829_v42 = vmax.f32 %v2771_v55, 0.0 }
 0x685   : > { %v4081_v37 = vpop.f32.mrf.mxu0 }
 0x686   : > { %v2827_v48 = vmax.f32 %v2763_v44, 0.0  ;;  %v2849_v0 = vpack.c.bf16 %v2829_v42, %v2828_v56  ;;  %v2784_v6 = vadd.f32 %v4081_v37, %v5299_v47 }
 0x687   : > { %v2775_v35 = vpop.f32.mrf.mxu0 }
 0x688   : > { %v2848_v54 = vpack.c.bf16 %v2827_v48, %v2826_v62  ;;  %v2776_v18 = vadd.f32 %v5299_v47, %v2775_v35  ;;  %v2832_v14 = vmax.f32 %v2784_v6, 0.0 }
 0x689   : > { %v4082_v5 = vpop.f32.mrf.mxu0 }
 0x68a   : > { %v2787_v51 = vadd.f32 %v4082_v5, %v5299_v47  ;;  %4123 = vmatprep.mubr.bf16.mxu1 %v2848_v54  ;;  %v2830_v10 = vmax.f32 %v2776_v18, 0.0 }
 0x68b   : > { %v2778_v2 = vpop.f32.mrf.mxu0  ;;  %4124 = vmatmul.mubr.bf16.gmra.mxu1 %v2849_v0 }
 0x68c   : > { %v2779_v9 = vadd.f32 %v5299_v47, %v2778_v2  ;;  %v2833_v63 = vmax.f32 %v2787_v51, 0.0 }
 0x68d   : > { %v4085_v58 = vpop.f32.mrf.mxu0 }
 0x68e   : > { %v2831_v13 = vmax.f32 %v2779_v9, 0.0  ;;  %v2851_v3 = vpack.c.bf16 %v2833_v63, %v2832_v14  ;;  %v2800_v31 = vadd.f32 %v4085_v58, %v5299_v47 }
 0x68f   : > { %v2791_v16 = vpop.f32.mrf.mxu0 }
 0x690   : > { %v2850_v4 = vpack.c.bf16 %v2831_v13, %v2830_v10  ;;  %v2792_v21 = vadd.f32 %v5299_v47, %v2791_v16  ;;  %v2836_v27 = vmax.f32 %v2800_v31, 0.0 }
 0x691   : > { %v4086_v12 = vpop.f32.mrf.mxu0 }
 0x692   : > { %v2803_v23 = vadd.f32 %v4086_v12, %v5299_v47  ;;  %4127 = vmatprep.mubr.bf16.mxu1 %v2850_v4  ;;  %v2834_v17 = vmax.f32 %v2792_v21, 0.0 }
 0x693   : > { %v2794_v11 = vpop.f32.mrf.mxu0  ;;  %4128 = vmatmul.mubr.bf16.gmra.mxu1 %v2851_v3 }
 0x694   : > { %v2795_v7 = vadd.f32 %v5299_v47, %v2794_v11  ;;  %v2837_v25 = vmax.f32 %v2803_v23, 0.0 }
 0x696   : > { %v2835_v41 = vmax.f32 %v2795_v7, 0.0  ;;  %v2853_v15 = vpack.c.bf16 %v2837_v25, %v2836_v27 }
 0x698   : > { %v2852_v32 = vpack.c.bf16 %v2835_v41, %v2834_v17 }
 0x69a   : > { %4131 = vmatprep.mubr.bf16.mxu1 %v2852_v32 }
 0x69b   : > { %4132 = vmatmul.mubr.bf16.gmra.mxu1 %v2853_v15 }
 0x720   : > { %v4105_v30 = vpop.f32.mrf.mxu1 }
 0x721   : > { %v2968_v39 = vadd.f32 %v4105_v30, %v5339_v33 }
 0x722   : > { %v2959_v47 = vpop.f32.mrf.mxu1 }
 0x723   : > { %3088 = vst [vmem:[%s5342_s18 + $0x10] sm:$0xff] %v2968_v39  ;;  %v2960_v29 = vadd.f32 %v5339_v33, %v2959_v47 }
 0x724   : > { %v4106_v20 = vpop.f32.mrf.mxu1 }
 0x725   : > { %3086 = vst [vmem:[%s5342_s18] sm:$0xff] %v2960_v29  ;;  %v2971_v36 = vadd.f32 %v4106_v20, %v5339_v33 }
 0x726   : > { %v2962_v38 = vpop.f32.mrf.mxu1 }
 0x727   : > { %3089 = vst [vmem:[%s5342_s18 + $0x18] sm:$0xff] %v2971_v36  ;;  %v2963_v43 = vadd.f32 %v5339_v33, %v2962_v38 }
 0x729   : > { %3087 = vst [vmem:[%s5342_s18 + $0x8] sm:$0xff] %v2963_v43 }
 0x72b   : > { %v4109_v52 = vpop.f32.mrf.mxu1 }
 0x72c   : > { %v2984_v45 = vadd.f32 %v4109_v52, %v5339_v33 }
 0x72d   : > { %v2975_v26 = vpop.f32.mrf.mxu1 }
 0x72e   : > { %3092 = vst [vmem:[%s5342_s18 + $0x30] sm:$0xff] %v2984_v45  ;;  %v2976_v22 = vadd.f32 %v5339_v33, %v2975_v26 }
 0x72f   : > { %v4110_v46 = vpop.f32.mrf.mxu1 }
 0x730   : > { %3090 = vst [vmem:[%s5342_s18 + $0x20] sm:$0xff] %v2976_v22  ;;  %v2987_v40 = vadd.f32 %v4110_v46, %v5339_v33 }
 0x731   : > { %v2978_v24 = vpop.f32.mrf.mxu1 }
 0x732   : > { %3093 = vst [vmem:[%s5342_s18 + $0x38] sm:$0xff] %v2987_v40  ;;  %v2979_v57 = vadd.f32 %v5339_v33, %v2978_v24 }
 0x733   : > { %v4113_v1 = vpop.f32.mrf.mxu1 }
 0x734   : > { %3091 = vst [vmem:[%s5342_s18 + $0x28] sm:$0xff] %v2979_v57  ;;  %v3000_v49 = vadd.f32 %v4113_v1, %v5339_v33 }
 0x735   : > { %v2991_v28 = vpop.f32.mrf.mxu1 }
 0x736   : > { %3096 = vst [vmem:[%s5342_s18 + $0x50] sm:$0xff] %v3000_v49  ;;  %v2992_v59 = vadd.f32 %v5339_v33, %v2991_v28 }
 0x737   : > { %v4114_v34 = vpop.f32.mrf.mxu1 }
 0x738   : > { %3094 = vst [vmem:[%s5342_s18 + $0x40] sm:$0xff] %v2992_v59  ;;  %v3003_v50 = vadd.f32 %v4114_v34, %v5339_v33 }
 0x739   : > { %v2994_v19 = vpop.f32.mrf.mxu1 }
 0x73a   : > { %3097 = vst [vmem:[%s5342_s18 + $0x58] sm:$0xff] %v3003_v50  ;;  %v2995_v8 = vadd.f32 %v5339_v33, %v2994_v19 }
 0x73b   : > { %v4117_v53 = vpop.f32.mrf.mxu1 }
 0x73c   : > { %3095 = vst [vmem:[%s5342_s18 + $0x48] sm:$0xff] %v2995_v8  ;;  %v3016_v55 = vadd.f32 %v4117_v53, %v5339_v33 }
 0x73d   : > { %v3007_v60 = vpop.f32.mrf.mxu1 }
 0x73e   : > { %3100 = vst [vmem:[%s5342_s18 + $0x70] sm:$0xff] %v3016_v55  ;;  %v3008_v61 = vadd.f32 %v5339_v33, %v3007_v60 }
 0x73f   : > { %v4118_v44 = vpop.f32.mrf.mxu1 }
 0x740   : > { %3098 = vst [vmem:[%s5342_s18 + $0x60] sm:$0xff] %v3008_v61  ;;  %v3019_v42 = vadd.f32 %v4118_v44, %v5339_v33 }
 0x741   : > { %v3010_v37 = vpop.f32.mrf.mxu1 }
 0x742   : > { %3101 = vst [vmem:[%s5342_s18 + $0x78] sm:$0xff] %v3019_v42  ;;  %v3011_v62 = vadd.f32 %v5339_v33, %v3010_v37 }
 0x743   : > { %v4121_v48 = vpop.f32.mrf.mxu1 }
 0x744   : > { %3099 = vst [vmem:[%s5342_s18 + $0x68] sm:$0xff] %v3011_v62  ;;  %v3032_v56 = vadd.f32 %v4121_v48, %v5339_v33 }
 0x745   : > { %v3023_v35 = vpop.f32.mrf.mxu1 }
 0x746   : > { %3104 = vst [vmem:[%s5342_s18 + $0x90] sm:$0xff] %v3032_v56  ;;  %v3024_v54 = vadd.f32 %v5339_v33, %v3023_v35 }
 0x747   : > { %v4122_v0 = vpop.f32.mrf.mxu1 }
 0x748   : > { %3102 = vst [vmem:[%s5342_s18 + $0x80] sm:$0xff] %v3024_v54  ;;  %v3035_v5 = vadd.f32 %v4122_v0, %v5339_v33 }
 0x749   : > { %v3026_v18 = vpop.f32.mrf.mxu1 }
 0x74a   : > { %3105 = vst [vmem:[%s5342_s18 + $0x98] sm:$0xff] %v3035_v5  ;;  %v3027_v51 = vadd.f32 %v5339_v33, %v3026_v18 }
 0x74b   : > { %v4125_v6 = vpop.f32.mrf.mxu1 }
 0x74c   : > { %3103 = vst [vmem:[%s5342_s18 + $0x88] sm:$0xff] %v3027_v51  ;;  %v3048_v2 = vadd.f32 %v4125_v6, %v5339_v33 }
 0x74d   : > { %v3039_v9 = vpop.f32.mrf.mxu1 }
 0x74e   : > { %3108 = vst [vmem:[%s5342_s18 + $0xb0] sm:$0xff] %v3048_v2  ;;  %v3040_v63 = vadd.f32 %v5339_v33, %v3039_v9 }
 0x74f   : > { %v4126_v58 = vpop.f32.mrf.mxu1 }
 0x750   : > { %3106 = vst [vmem:[%s5342_s18 + $0xa0] sm:$0xff] %v3040_v63  ;;  %v3051_v10 = vadd.f32 %v4126_v58, %v5339_v33 }
 0x751   : > { %v3042_v13 = vpop.f32.mrf.mxu1 }
 0x752   : > { %3109 = vst [vmem:[%s5342_s18 + $0xb8] sm:$0xff] %v3051_v10  ;;  %v3043_v14 = vadd.f32 %v5339_v33, %v3042_v13 }
 0x753   : > { %v4129_v16 = vpop.f32.mrf.mxu1 }
 0x754   : > { %3107 = vst [vmem:[%s5342_s18 + $0xa8] sm:$0xff] %v3043_v14  ;;  %v3064_v4 = vadd.f32 %v4129_v16, %v5339_v33 }
 0x755   : > { %v3055_v3 = vpop.f32.mrf.mxu1 }
 0x756   : > { %3112 = vst [vmem:[%s5342_s18 + $0xd0] sm:$0xff] %v3064_v4  ;;  %v3056_v12 = vadd.f32 %v5339_v33, %v3055_v3 }
 0x757   : > { %v4130_v21 = vpop.f32.mrf.mxu1 }
 0x758   : > { %3110 = vst [vmem:[%s5342_s18 + $0xc0] sm:$0xff] %v3056_v12  ;;  %v3067_v23 = vadd.f32 %v4130_v21, %v5339_v33 }
 0x759   : > { %v3058_v31 = vpop.f32.mrf.mxu1 }
 0x75a   : > { %3113 = vst [vmem:[%s5342_s18 + $0xd8] sm:$0xff] %v3067_v23  ;;  %v3059_v11 = vadd.f32 %v5339_v33, %v3058_v31 }
 0x75b   : > { %v4133_v7 = vpop.f32.mrf.mxu1 }
 0x75c   : > { %3111 = vst [vmem:[%s5342_s18 + $0xc8] sm:$0xff] %v3059_v11  ;;  %v3080_v25 = vadd.f32 %v4133_v7, %v5339_v33 }
 0x75d   : > { %v3071_v17 = vpop.f32.mrf.mxu1 }
 0x75e   : > { %3116 = vst [vmem:[%s5342_s18 + $0xf0] sm:$0xff] %v3080_v25  ;;  %v3072_v41 = vadd.f32 %v5339_v33, %v3071_v17 }
 0x75f   : > { %v4134_v27 = vpop.f32.mrf.mxu1 }
 0x760   : > { %3114 = vst [vmem:[%s5342_s18 + $0xe0] sm:$0xff] %v3072_v41  ;;  %v3083_v32 = vadd.f32 %v4134_v27, %v5339_v33 }
 0x761   : > { %v3074_v15 = vpop.f32.mrf.mxu1 }
 0x762   : > { %3117 = vst [vmem:[%s5342_s18 + $0xf8] sm:$0xff] %v3083_v32  ;;  %v3075_v30 = vadd.f32 %v5339_v33, %v3074_v15 }
 0x764   : > { %3115 = vst [vmem:[%s5342_s18 + $0xe8] sm:$0xff] %v3075_v30 }
 0x765   : > { %4320 = shalt.err (!%p4317_p3)
}
 0x766   : > { %s4321_s26 = scalar_lea.hbm %s5409_s0, 4096  ;;  %s4325_s15 = scalar_lea.hbm %s5469_s11, 8192 }
 0x767   : > { %p4322_p4 = scmp.ne.s32.totalorder %s5409_s0, %s4321_s26  ;;  %p4326_p9 = scmp.lt.s32.totalorder %s5409_s0, %s5469_s11 }
 0x768   : > { %p4327_p10 = scmp.lt.s32.totalorder %s4325_s15, %s4321_s26 }
 0x769   : > { %p4323_p7 = pnand %p4322_p4, %p4477_p5 }
 0x76a   : > { %p4328_p11 = por %p4327_p10, %p4326_p9 }
 0x76b   : > { %p4324_p8 = pneg %p4323_p7 }
 0x76d   : > { %p4329_p12 = pnand %p4328_p11, %p4324_p8 }
 0x76f   : > { %4332 = shalt.err (!%p4329_p12)
}
 0x770   : > { %s4372_s30 = smov 128   ;;  %s4373_s29 = smov 8  }
 0x771   : > { %4135 = dma.vmem_to_hbm [thread:$0]  (%p4477_p5), %s5411_s20, 4096, %s5409_s0, %s5418_s25, %s4372_s30, %s4372_s30, %s4373_s29  }
 0x772 PF: > { %p4141_p13 = scmp.ge.s32.totalorder %s4367_s24, 2  ;;  %s3382_s16 = sand.u32 1, %s4355_s21  }
 0x773   : > { %s3383_s26 = scalar_lea.sflag [#allocation3], %s3382_s16 }
 0x774   : > { %p4138_p0 = pnand %p4141_p13, %p4481_p6 }
 0x776   : > { %p4139_p1 = pneg %p4138_p0 }
 0x778   : > { %4350 = dma.done.wait (%p4139_p1), %s3383_s26, 4096  }
 0x779   : > { %4352 = vsyncadd (%p4139_p1), %s3383_s26, 4294963200  ;;  %s5476_s18 = sld [smem:[#allocation5_spill]]  ;;  %p23_p2 = scmp.ge.s32.totalorder %s4464_s27, 4  }
 0x77a   : > { %s5477_s21 = smov %s4359_s22  ;;  %s5478_s22 = smov %s4363_s23 }
 0x77b   : > { %s5480_s24 = smov %s4464_s27  ;;  %25 = sbr.rel (!%p23_p2) target bundleno = 5 (0x5), region = 114 }
 0x77f   : > { %s5479_s23 = smov %s5476_s18 }
 0x780   :  { %3396 = vsyncpa [#allocation3], 1 }
 0x781   :  { %3398 = vsyncpa [#allocation3 + $0x1], 1 }

</bundles_post_ra>
